<compile_context>
chip_gen: v5e
topology: v5e:2x2
jax: 0.10.0
libtpu: 0.0.40
codegen_flags: <defaults>
</compile_context>

<pallas_src>
import jax
import jax.numpy as jnp
from jax import lax
from jax.experimental import pallas as pl
from jax.experimental.pallas import tpu as pltpu

# ---- model hyper-parameters (stand-ins for config.*) ----
INPUT_FEATURES = 16     # per-frame feature dim
HIDDEN_SIZE = 16        # GRU hidden = HIDDEN_SIZE * 2 = 32
NUM_LAYERS = 1
SEQ_LEN = 16            # input time frames
BATCH = 2

C1 = 24                 # conv1 out channels
C2 = 32                 # conv2 out channels
H = HIDDEN_SIZE * 2     # GRU hidden size (32)
ATT_HEADS = 2
EPS = 1e-5

_LANES = 128
_BF16_SUB = 16          # bf16 sublane packing (row alignment for slab pieces)


# -----------------------------------------------------------------------------
# deterministic parameter init (shapes follow the nn.Module __init__)
# -----------------------------------------------------------------------------
def init_params(key):
    ks = jax.random.split(key, 24)

    def nrm(k, shape, scale=0.2):
        return (scale * jax.random.normal(k, shape)).astype(jnp.float32)

    p = {}
    p["conv1_w"] = nrm(ks[0], (C1, INPUT_FEATURES, 3))
    p["conv1_b"] = nrm(ks[1], (C1,))
    p["bn1_gamma"] = 1.0 + nrm(ks[2], (C1,), 0.05)
    p["bn1_beta"] = nrm(ks[3], (C1,), 0.05)
    p["bn1_mean"] = nrm(ks[4], (C1,), 0.05)
    p["bn1_var"] = 1.0 + jnp.abs(nrm(ks[5], (C1,), 0.05))
    p["conv2_w"] = nrm(ks[6], (C2, C1, 3))
    p["conv2_b"] = nrm(ks[7], (C2,))
    p["bn2_gamma"] = 1.0 + nrm(ks[8], (C2,), 0.05)
    p["bn2_beta"] = nrm(ks[9], (C2,), 0.05)
    p["bn2_mean"] = nrm(ks[10], (C2,), 0.05)
    p["bn2_var"] = 1.0 + jnp.abs(nrm(ks[11], (C2,), 0.05))
    p["gru_w_ih"] = nrm(ks[12], (3 * H, C2))      # [r|z|n] rows, PyTorch order
    p["gru_w_hh"] = nrm(ks[13], (3 * H, H))
    p["gru_b_ih"] = nrm(ks[14], (3 * H,))
    p["gru_b_hh"] = nrm(ks[15], (3 * H,))
    p["att_w"] = nrm(ks[16], (ATT_HEADS, H))
    p["att_b"] = nrm(ks[17], (ATT_HEADS,))
    p["fc1_w"] = nrm(ks[18], (32, H))
    p["fc1_b"] = nrm(ks[19], (32,))
    p["fc2_w"] = nrm(ks[20], (16, 32))
    p["fc2_b"] = nrm(ks[21], (16,))
    p["fc3_w"] = nrm(ks[22], (1, 16))
    p["fc3_b"] = nrm(ks[23], (1,))
    return p


# -----------------------------------------------------------------------------
# operand packing (wrapper-side layout plumbing, no compute hoisting)
# -----------------------------------------------------------------------------
def _pack_weights(mats):
    """Pack 2-D matrices row-wise into one (rows, 128) bf16 slab.

    Each matrix starts at a 16-row (bf16 tile) aligned offset.
    Returns (slab, offsets) with offsets[name] = (row_start, n_rows, n_cols).
    """
    pieces, offsets, row = [], {}, 0
    for name, m in mats:
        m = jnp.asarray(m, jnp.float32)
        nr, nc = m.shape
        pad_r = (-nr) % _BF16_SUB
        pieces.append(jnp.pad(m, ((0, pad_r), (0, _LANES - nc))))
        offsets[name] = (row, nr, nc)
        row += nr + pad_r
    slab = jnp.concatenate(pieces, axis=0).astype(jnp.bfloat16)
    return slab, offsets


def _pack_biases(vecs):
    """Pack 1-D bias/shift vectors as rows of a (len(vecs), 128) f32 slab."""
    rows = []
    for v in vecs:
        v = jnp.asarray(v, jnp.float32).reshape(-1)
        rows.append(jnp.pad(v, (0, _LANES - v.shape[0]))[None, :])
    return jnp.concatenate(rows, axis=0)


# -----------------------------------------------------------------------------
# Pallas kernel: one batch chunk per program, everything in registers/VMEM
# -----------------------------------------------------------------------------
def _make_kernel(Bc, T, Tp, F, woffs, brows):
    bf16 = jnp.bfloat16
    f32 = jnp.float32

    def kernel(x_ref, w_ref, b_ref, out_ref):
        def wmat(name):                          # static row/lane slice of the weight slab
            r, nr, nc = woffs[name]
            return w_ref[r:r + nr, 0:nc]         # (nr, nc) bf16

        def bvec(name, n):                       # static slice of the bias slab
            r = brows[name]
            return b_ref[r:r + 1, 0:n]           # (1, n) f32

        def conv(x3, wname, bname, cin, cout):
            # x3: (Bc, T, cin) bf16.  Fused k=3 / pad=1 conv as one matmul on a
            # time-shifted im2col, with BN(eval)+bias folded into w / shift.
            z = jnp.zeros((Bc, 1, cin), bf16)
            xp = jnp.concatenate([z, x3, z], axis=1)                      # (Bc, T+2, cin)
            taps = jnp.concatenate(
                [xp[:, 0:T], xp[:, 1:T + 1], xp[:, 2:T + 2]], axis=2)     # (Bc, T, 3*cin)
            y = jnp.dot(taps.reshape(Bc * T, 3 * cin), wmat(wname),
                        preferred_element_type=f32)
            return jnp.maximum(y + bvec(bname, cout), 0.0)                # (Bc*T, cout) f32

        # ---- conv1 + BN + ReLU, conv2 + BN + ReLU (batch folded into M) ----
        x3 = x_ref[0]                                                     # (Bc, T, F) bf16
        h1 = conv(x3, "w1", "s1", F, C1)                                  # (Bc*T, C1)
        h2 = conv(h1.astype(bf16).reshape(Bc, T, C1), "w2", "s2", C1, C2)  # (Bc*T, C2)

        # ---- MaxPool1d(kernel=2, stride=2) over time (adjacent row pairs) ----
        pooled = jnp.max(h2.reshape(Bc * Tp, 2, C2), axis=1)              # (Bc*Tp, C2)

        # ---- GRU: all x-side gate pre-activations in one fused matmul ----
        gx = (jnp.dot(pooled.astype(bf16), wmat("wi"), preferred_element_type=f32)
              + bvec("bi", 3 * H)).reshape(Bc, Tp, 3 * H)
        wh = wmat("wh")                                                   # (H, 3H) bf16
        bh = bvec("bh", 3 * H)                                            # (1, 3H) f32

        h = jnp.zeros((Bc, H), f32)
        hs = []
        for t in range(Tp):        # fully unrolled; hidden state stays in vregs
            gh = jnp.dot(h.astype(bf16), wh, preferred_element_type=f32) + bh
            gxt = gx[:, t]                                                # (Bc, 3H)
            r = jax.nn.sigmoid(gxt[:, 0:H] + gh[:, 0:H])
            zg = jax.nn.sigmoid(gxt[:, H:2 * H] + gh[:, H:2 * H])
            n = jnp.tanh(gxt[:, 2 * H:] + r * gh[:, 2 * H:])
            h = (1.0 - zg) * n + zg * h
            hs.append(h)
        g2 = jnp.concatenate(hs, axis=0)                                  # (Tp*Bc, H), time-major

        # ---- 2-head attention: softmax over time, head-mean folded in ----
        att = (jnp.dot(g2.astype(bf16), wmat("watt"), preferred_element_type=f32)
               + bvec("batt", ATT_HEADS)).reshape(Tp, Bc, ATT_HEADS)
        att = att - jnp.max(att, axis=0, keepdims=True)
        e = jnp.exp(att)
        wgt = e / jnp.sum(e, axis=0, keepdims=True)                       # (Tp, Bc, 2)
        # mean_h sum_t w[t,h] g[t]  ==  sum_t (mean_h w[t,h]) g[t]
        wmean = 0.5 * (wgt[:, :, 0:1] + wgt[:, :, 1:2])                   # (Tp, Bc, 1)
        context = jnp.sum(wmean * g2.reshape(Tp, Bc, H), axis=0)          # (Bc, H)

        # ---- MLP head (Dropout == identity at inference) ----
        y = jnp.dot(context.astype(bf16), wmat("wfc1"),
                    preferred_element_type=f32) + bvec("bfc1", 32)
        y = jnp.where(y > 0, y, 0.1 * y)                                  # LeakyReLU(0.1)
        y = jnp.dot(y.astype(bf16), wmat("wfc2"),
                    preferred_element_type=f32) + bvec("bfc2", 16)
        y = jnp.where(y > 0, y, 0.1 * y)
        y = jnp.dot(y.astype(bf16), wmat("wfc3"),
                    preferred_element_type=f32) + bvec("bfc3", 1)
        out_ref[0] = y                                                    # (Bc, 1)

    return kernel


# -----------------------------------------------------------------------------
# wrapper: parameter folding / packing (glue) + pallas_call
# -----------------------------------------------------------------------------
def tiny_wake_word_forward(x, p):
    B, T, F = x.shape
    assert T % 2 == 0, "MaxPool1d(2,2) needs an even number of frames"
    Tp = T // 2

    # Fully fold the batch for small B (grid of 1); for larger even batches
    # keep a 2-way "parallel" grid so both v7x TensorCores get work.
    G = 2 if (B >= 4 and B % 2 == 0) else 1
    Bc = B // G

    def conv_pack(w, b, gamma, beta, mean, var):
        scale = gamma / jnp.sqrt(var + EPS)
        shift = beta - mean * scale
        # (Cout, Cin, 3) -> (3*Cin, Cout) matmul slab, rows ordered k*Cin + cin
        wcat = jnp.transpose(w, (2, 1, 0)).reshape(-1, w.shape[0])
        return wcat * scale[None, :], b * scale + shift        # BN(eval) folded

    w1, s1 = conv_pack(p["conv1_w"], p["conv1_b"], p["bn1_gamma"], p["bn1_beta"],
                       p["bn1_mean"], p["bn1_var"])
    w2, s2 = conv_pack(p["conv2_w"], p["conv2_b"], p["bn2_gamma"], p["bn2_beta"],
                       p["bn2_mean"], p["bn2_var"])

    wslab, woffs = _pack_weights([
        ("w1", w1), ("w2", w2),
        ("wi", p["gru_w_ih"].T), ("wh", p["gru_w_hh"].T),      # columns ordered [r|z|n]
        ("watt", p["att_w"].T),
        ("wfc1", p["fc1_w"].T), ("wfc2", p["fc2_w"].T), ("wfc3", p["fc3_w"].T),
    ])
    bslab = _pack_biases([s1, s2, p["gru_b_ih"], p["gru_b_hh"], p["att_b"],
                          p["fc1_b"], p["fc2_b"], p["fc3_b"]])
    brows = {"s1": 0, "s2": 1, "bi": 2, "bh": 3,
             "batt": 4, "bfc1": 5, "bfc2": 6, "bfc3": 7}

    x_in = x.astype(jnp.bfloat16).reshape(G, Bc, T, F)

    out = pl.pallas_call(
        _make_kernel(Bc, T, Tp, F, woffs, brows),
        out_shape=jax.ShapeDtypeStruct((G, Bc, 1), jnp.float32),
        grid_spec=pltpu.PrefetchScalarGridSpec(
            num_scalar_prefetch=0,
            grid=(G,),
            in_specs=[
                pl.BlockSpec((1, Bc, T, F), lambda i: (i, 0, 0, 0)),
                pl.BlockSpec(wslab.shape, lambda i: (0, 0)),    # replicated weight slab
                pl.BlockSpec(bslab.shape, lambda i: (0, 0)),    # replicated bias slab
            ],
            out_specs=pl.BlockSpec((1, Bc, 1), lambda i: (i, 0, 0)),
        ),
        compiler_params=pltpu.CompilerParams(dimension_semantics=("parallel",)),
    )(x_in, wslab, bslab)
    return out.reshape(B, 1)


# -----------------------------------------------------------------------------
# pure-JAX reference (independent implementation, for verification)
# -----------------------------------------------------------------------------
def reference_forward(x, p):
    xt = jnp.transpose(x, (0, 2, 1))                        # (B, F, T) -- NCH like torch

    def conv1d(inp, w, b):
        out = lax.conv_general_dilated(inp, w, window_strides=(1,), padding=((1, 1),),
                                       dimension_numbers=("NCH", "OIH", "NCH"))
        return out + b[None, :, None]

    def bn(inp, g, be, m, v):
        return ((inp - m[None, :, None]) / jnp.sqrt(v[None, :, None] + EPS)
                * g[None, :, None] + be[None, :, None])

    h = jax.nn.relu(bn(conv1d(xt, p["conv1_w"], p["conv1_b"]),
                       p["bn1_gamma"], p["bn1_beta"], p["bn1_mean"], p["bn1_var"]))
    h = jax.nn.relu(bn(conv1d(h, p["conv2_w"], p["conv2_b"]),
                       p["bn2_gamma"], p["bn2_beta"], p["bn2_mean"], p["bn2_var"]))
    B, C, T = h.shape
    h = jnp.max(h.reshape(B, C, T // 2, 2), axis=-1)        # MaxPool1d(2,2)
    seq = jnp.transpose(h, (0, 2, 1))                       # (B, Tp, C2)

    w_ih, w_hh, b_ih, b_hh = p["gru_w_ih"], p["gru_w_hh"], p["gru_b_ih"], p["gru_b_hh"]

    def gru_cell(hprev, xt_):
        gi = xt_ @ w_ih.T + b_ih
        gh = hprev @ w_hh.T + b_hh
        r = jax.nn.sigmoid(gi[:, :H] + gh[:, :H])
        z = jax.nn.sigmoid(gi[:, H:2 * H] + gh[:, H:2 * H])
        n = jnp.tanh(gi[:, 2 * H:] + r * gh[:, 2 * H:])
        hn = (1 - z) * n + z * hprev
        return hn, hn

    h0 = jnp.zeros((B, H), jnp.float32)
    _, ys = lax.scan(gru_cell, h0, jnp.transpose(seq, (1, 0, 2)))
    gru_out = jnp.transpose(ys, (1, 0, 2))                  # (B, Tp, H)

    att = gru_out @ p["att_w"].T + p["att_b"]
    attw = jax.nn.softmax(att, axis=1)
    contexts = [jnp.sum(attw[:, :, hh:hh + 1] * gru_out, axis=1) for hh in range(ATT_HEADS)]
    context = jnp.mean(jnp.stack(contexts), axis=0)

    def leaky(v):
        return jnp.where(v > 0, v, 0.1 * v)

    y = leaky(context @ p["fc1_w"].T + p["fc1_b"])
    y = leaky(y @ p["fc2_w"].T + p["fc2_b"])
    y = y @ p["fc3_w"].T + p["fc3_b"]
    return y


if __name__ == "__main__":
    import numpy as np

    key = jax.random.PRNGKey(0)
    kx, kp = jax.random.split(key)
    x = jax.random.normal(kx, (BATCH, SEQ_LEN, INPUT_FEATURES), dtype=jnp.float32)
    params = init_params(kp)

    out = jax.block_until_ready(tiny_wake_word_forward(x, params))
    assert out.shape == (BATCH, 1)

    # reference at full f32 matmul precision (local context, no global side effect)
    with jax.default_matmul_precision("float32"):
        ref = jax.block_until_ready(reference_forward(x, params))

    np.testing.assert_allclose(np.asarray(out), np.asarray(ref), rtol=2e-2, atol=2e-2)
    print("KERNEL_OK")
</pallas_src>

<mosaic_0001>
module attributes {stable_mosaic.version = 11 : i64} {
  func.func @kernel(%arg0: i32, %arg1: memref<1x2x16x16xbf16, #tpu.memory_space<vmem>>, %arg2: memref<304x128xbf16, #tpu.memory_space<vmem>>, %arg3: memref<8x128xf32, #tpu.memory_space<vmem>>, %arg4: memref<1x2x1xf32, #tpu.memory_space<vmem>>) attributes {dimension_semantics = [#tpu.dimension_semantics<parallel>], iteration_bounds = array<i64: 1>, scalar_prefetch = 0 : i64, scratch_operands = 0 : i64, tpu.core_type = #tpu.core_type<tc>, window_params = [{transform_indices = @transform_0, window_bounds = array<i64: 1, 2, 16, 16>}, {pipeline_mode = #tpu.pipeline_mode<synchronous>, transform_indices = @transform_1, window_bounds = array<i64: 304, 128>}, {pipeline_mode = #tpu.pipeline_mode<synchronous>, transform_indices = @transform_2, window_bounds = array<i64: 8, 128>}, {transform_indices = @transform_3, window_bounds = array<i64: 1, 2, 1>}]} {
    %c0 = arith.constant 0 : index
    %c0_0 = arith.constant 0 : index
    %c0_1 = arith.constant 0 : index
    %c0_2 = arith.constant 0 : index
    %0 = vector.load %arg1[%c0, %c0_0, %c0_1, %c0_2] : memref<1x2x16x16xbf16, #tpu.memory_space<vmem>>, vector<1x2x16x16xbf16>
    %1 = vector.shape_cast %0 : vector<1x2x16x16xbf16> to vector<2x16x16xbf16>
    %cst = arith.constant 0.000000e+00 : bf16
    %2 = vector.broadcast %cst : bf16 to vector<2x1x16xbf16>
    %3 = tpu.concatenate %2, %1, %2 in 1 : vector<2x1x16xbf16>, vector<2x16x16xbf16>, vector<2x1x16xbf16> -> vector<2x18x16xbf16>
    %4 = vector.extract_strided_slice %3 {offsets = [0, 0, 0], sizes = [2, 16, 16], strides = [1, 1, 1]} : vector<2x18x16xbf16> to vector<2x16x16xbf16>
    %5 = vector.extract_strided_slice %3 {offsets = [0, 1, 0], sizes = [2, 16, 16], strides = [1, 1, 1]} : vector<2x18x16xbf16> to vector<2x16x16xbf16>
    %6 = vector.extract_strided_slice %3 {offsets = [0, 2, 0], sizes = [2, 16, 16], strides = [1, 1, 1]} : vector<2x18x16xbf16> to vector<2x16x16xbf16>
    %7 = tpu.concatenate %4, %5, %6 in 2 : vector<2x16x16xbf16>, vector<2x16x16xbf16>, vector<2x16x16xbf16> -> vector<2x16x48xbf16>
    %8 = vector.shape_cast %7 : vector<2x16x48xbf16> to vector<32x48xbf16>
    %c0_3 = arith.constant 0 : index
    %c0_4 = arith.constant 0 : index
    %9 = vector.load %arg2[%c0_3, %c0_4] : memref<304x128xbf16, #tpu.memory_space<vmem>>, vector<48x24xbf16>
    %cst_5 = arith.constant dense<0.000000e+00> : vector<32x24xf32>
    %10 = tpu.matmul %8, %9, %cst_5 {dimension_numbers = #tpu.dot_dimension_numbers<[1], [0], [0], [1], [0, 0, 1, 1], [], []>} : vector<32x48xbf16>, vector<48x24xbf16>, vector<32x24xf32> -> vector<32x24xf32>
    %c0_6 = arith.constant 0 : index
    %c0_7 = arith.constant 0 : index
    %11 = vector.load %arg3[%c0_6, %c0_7] : memref<8x128xf32, #tpu.memory_space<vmem>>, vector<1x24xf32>
    %12 = vector.broadcast %11 : vector<1x24xf32> to vector<32x24xf32>
    %13 = arith.addf %10, %12 : vector<32x24xf32>
    %cst_8 = arith.constant 0.000000e+00 : f32
    %14 = vector.broadcast %cst_8 : f32 to vector<32x24xf32>
    %15 = arith.maximumf %13, %14 : vector<32x24xf32>
    %16 = arith.truncf %15 : vector<32x24xf32> to vector<32x24xbf16>
    %17 = vector.shape_cast %16 : vector<32x24xbf16> to vector<2x16x24xbf16>
    %cst_9 = arith.constant 0.000000e+00 : bf16
    %18 = vector.broadcast %cst_9 : bf16 to vector<2x1x24xbf16>
    %19 = tpu.concatenate %18, %17, %18 in 1 : vector<2x1x24xbf16>, vector<2x16x24xbf16>, vector<2x1x24xbf16> -> vector<2x18x24xbf16>
    %20 = vector.extract_strided_slice %19 {offsets = [0, 0, 0], sizes = [2, 16, 24], strides = [1, 1, 1]} : vector<2x18x24xbf16> to vector<2x16x24xbf16>
    %21 = vector.extract_strided_slice %19 {offsets = [0, 1, 0], sizes = [2, 16, 24], strides = [1, 1, 1]} : vector<2x18x24xbf16> to vector<2x16x24xbf16>
    %22 = vector.extract_strided_slice %19 {offsets = [0, 2, 0], sizes = [2, 16, 24], strides = [1, 1, 1]} : vector<2x18x24xbf16> to vector<2x16x24xbf16>
    %23 = tpu.concatenate %20, %21, %22 in 2 : vector<2x16x24xbf16>, vector<2x16x24xbf16>, vector<2x16x24xbf16> -> vector<2x16x72xbf16>
    %24 = vector.shape_cast %23 : vector<2x16x72xbf16> to vector<32x72xbf16>
    %c48 = arith.constant 48 : index
    %c0_10 = arith.constant 0 : index
    %25 = vector.load %arg2[%c48, %c0_10] : memref<304x128xbf16, #tpu.memory_space<vmem>>, vector<72x32xbf16>
    %cst_11 = arith.constant dense<0.000000e+00> : vector<32x32xf32>
    %26 = tpu.matmul %24, %25, %cst_11 {dimension_numbers = #tpu.dot_dimension_numbers<[1], [0], [0], [1], [0, 0, 1, 1], [], []>} : vector<32x72xbf16>, vector<72x32xbf16>, vector<32x32xf32> -> vector<32x32xf32>
    %c1 = arith.constant 1 : index
    %c0_12 = arith.constant 0 : index
    %27 = vector.load %arg3[%c1, %c0_12] : memref<8x128xf32, #tpu.memory_space<vmem>>, vector<1x32xf32>
    %28 = vector.broadcast %27 : vector<1x32xf32> to vector<32x32xf32>
    %29 = arith.addf %26, %28 : vector<32x32xf32>
    %cst_13 = arith.constant 0.000000e+00 : f32
    %30 = vector.broadcast %cst_13 : f32 to vector<32x32xf32>
    %31 = arith.maximumf %29, %30 : vector<32x32xf32>
    %32 = vector.shape_cast %31 : vector<32x32xf32> to vector<16x2x32xf32>
    %cst_14 = arith.constant dense<0xFF800000> : vector<16x32xf32>
    %33 = vector.multi_reduction <maximumf>, %32, %cst_14 [1] : vector<16x2x32xf32> to vector<16x32xf32>
    %34 = arith.truncf %33 : vector<16x32xf32> to vector<16x32xbf16>
    %c128 = arith.constant 128 : index
    %c0_15 = arith.constant 0 : index
    %35 = vector.load %arg2[%c128, %c0_15] : memref<304x128xbf16, #tpu.memory_space<vmem>>, vector<32x96xbf16>
    %cst_16 = arith.constant dense<0.000000e+00> : vector<16x96xf32>
    %36 = tpu.matmul %34, %35, %cst_16 {dimension_numbers = #tpu.dot_dimension_numbers<[1], [0], [0], [1], [0, 0, 1, 1], [], []>} : vector<16x32xbf16>, vector<32x96xbf16>, vector<16x96xf32> -> vector<16x96xf32>
    %c2 = arith.constant 2 : index
    %c0_17 = arith.constant 0 : index
    %37 = vector.load %arg3[%c2, %c0_17] : memref<8x128xf32, #tpu.memory_space<vmem>>, vector<1x96xf32>
    %38 = vector.broadcast %37 : vector<1x96xf32> to vector<16x96xf32>
    %39 = arith.addf %36, %38 : vector<16x96xf32>
    %40 = vector.shape_cast %39 : vector<16x96xf32> to vector<2x8x96xf32>
    %c160 = arith.constant 160 : index
    %c0_18 = arith.constant 0 : index
    %41 = vector.load %arg2[%c160, %c0_18] : memref<304x128xbf16, #tpu.memory_space<vmem>>, vector<32x96xbf16>
    %c3 = arith.constant 3 : index
    %c0_19 = arith.constant 0 : index
    %42 = vector.load %arg3[%c3, %c0_19] : memref<8x128xf32, #tpu.memory_space<vmem>>, vector<1x96xf32>
    %cst_20 = arith.constant 0.000000e+00 : f32
    %43 = vector.broadcast %cst_20 : f32 to vector<2x32xf32>
    %44 = arith.truncf %43 : vector<2x32xf32> to vector<2x32xbf16>
    %cst_21 = arith.constant dense<0.000000e+00> : vector<2x96xf32>
    %45 = tpu.matmul %44, %41, %cst_21 {dimension_numbers = #tpu.dot_dimension_numbers<[1], [0], [0], [1], [0, 0, 1, 1], [], []>} : vector<2x32xbf16>, vector<32x96xbf16>, vector<2x96xf32> -> vector<2x96xf32>
    %46 = vector.broadcast %42 : vector<1x96xf32> to vector<2x96xf32>
    %47 = arith.addf %45, %46 : vector<2x96xf32>
    %48 = vector.extract_strided_slice %40 {offsets = [0, 0, 0], sizes = [2, 1, 96], strides = [1, 1, 1]} : vector<2x8x96xf32> to vector<2x1x96xf32>
    %49 = vector.shape_cast %48 : vector<2x1x96xf32> to vector<2x96xf32>
    %50 = vector.extract_strided_slice %49 {offsets = [0, 0], sizes = [2, 32], strides = [1, 1]} : vector<2x96xf32> to vector<2x32xf32>
    %51 = vector.extract_strided_slice %47 {offsets = [0, 0], sizes = [2, 32], strides = [1, 1]} : vector<2x96xf32> to vector<2x32xf32>
    %52 = arith.addf %50, %51 : vector<2x32xf32>
    %53 = arith.negf %52 : vector<2x32xf32>
    %54 = math.exp %53 : vector<2x32xf32>
    %cst_22 = arith.constant 1.000000e+00 : f32
    %55 = vector.broadcast %cst_22 : f32 to vector<2x32xf32>
    %56 = arith.addf %55, %54 : vector<2x32xf32>
    %57 = arith.divf %55, %56 : vector<2x32xf32>
    %58 = vector.extract_strided_slice %49 {offsets = [0, 32], sizes = [2, 32], strides = [1, 1]} : vector<2x96xf32> to vector<2x32xf32>
    %59 = vector.extract_strided_slice %47 {offsets = [0, 32], sizes = [2, 32], strides = [1, 1]} : vector<2x96xf32> to vector<2x32xf32>
    %60 = arith.addf %58, %59 : vector<2x32xf32>
    %61 = arith.negf %60 : vector<2x32xf32>
    %62 = math.exp %61 : vector<2x32xf32>
    %cst_23 = arith.constant 1.000000e+00 : f32
    %63 = vector.broadcast %cst_23 : f32 to vector<2x32xf32>
    %64 = arith.addf %63, %62 : vector<2x32xf32>
    %65 = arith.divf %63, %64 : vector<2x32xf32>
    %66 = vector.extract_strided_slice %49 {offsets = [0, 64], sizes = [2, 32], strides = [1, 1]} : vector<2x96xf32> to vector<2x32xf32>
    %67 = vector.extract_strided_slice %47 {offsets = [0, 64], sizes = [2, 32], strides = [1, 1]} : vector<2x96xf32> to vector<2x32xf32>
    %68 = arith.mulf %57, %67 : vector<2x32xf32>
    %69 = arith.addf %66, %68 : vector<2x32xf32>
    %70 = math.tanh %69 : vector<2x32xf32>
    %cst_24 = arith.constant 1.000000e+00 : f32
    %71 = vector.broadcast %cst_24 : f32 to vector<2x32xf32>
    %72 = arith.subf %71, %65 : vector<2x32xf32>
    %73 = arith.mulf %72, %70 : vector<2x32xf32>
    %74 = arith.mulf %65, %43 : vector<2x32xf32>
    %75 = arith.addf %73, %74 : vector<2x32xf32>
    %76 = arith.truncf %75 : vector<2x32xf32> to vector<2x32xbf16>
    %cst_25 = arith.constant dense<0.000000e+00> : vector<2x96xf32>
    %77 = tpu.matmul %76, %41, %cst_25 {dimension_numbers = #tpu.dot_dimension_numbers<[1], [0], [0], [1], [0, 0, 1, 1], [], []>} : vector<2x32xbf16>, vector<32x96xbf16>, vector<2x96xf32> -> vector<2x96xf32>
    %78 = vector.broadcast %42 : vector<1x96xf32> to vector<2x96xf32>
    %79 = arith.addf %77, %78 : vector<2x96xf32>
    %80 = vector.extract_strided_slice %40 {offsets = [0, 1, 0], sizes = [2, 1, 96], strides = [1, 1, 1]} : vector<2x8x96xf32> to vector<2x1x96xf32>
    %81 = vector.shape_cast %80 : vector<2x1x96xf32> to vector<2x96xf32>
    %82 = vector.extract_strided_slice %81 {offsets = [0, 0], sizes = [2, 32], strides = [1, 1]} : vector<2x96xf32> to vector<2x32xf32>
    %83 = vector.extract_strided_slice %79 {offsets = [0, 0], sizes = [2, 32], strides = [1, 1]} : vector<2x96xf32> to vector<2x32xf32>
    %84 = arith.addf %82, %83 : vector<2x32xf32>
    %85 = arith.negf %84 : vector<2x32xf32>
    %86 = math.exp %85 : vector<2x32xf32>
    %cst_26 = arith.constant 1.000000e+00 : f32
    %87 = vector.broadcast %cst_26 : f32 to vector<2x32xf32>
    %88 = arith.addf %87, %86 : vector<2x32xf32>
    %89 = arith.divf %87, %88 : vector<2x32xf32>
    %90 = vector.extract_strided_slice %81 {offsets = [0, 32], sizes = [2, 32], strides = [1, 1]} : vector<2x96xf32> to vector<2x32xf32>
    %91 = vector.extract_strided_slice %79 {offsets = [0, 32], sizes = [2, 32], strides = [1, 1]} : vector<2x96xf32> to vector<2x32xf32>
    %92 = arith.addf %90, %91 : vector<2x32xf32>
    %93 = arith.negf %92 : vector<2x32xf32>
    %94 = math.exp %93 : vector<2x32xf32>
    %cst_27 = arith.constant 1.000000e+00 : f32
    %95 = vector.broadcast %cst_27 : f32 to vector<2x32xf32>
    %96 = arith.addf %95, %94 : vector<2x32xf32>
    %97 = arith.divf %95, %96 : vector<2x32xf32>
    %98 = vector.extract_strided_slice %81 {offsets = [0, 64], sizes = [2, 32], strides = [1, 1]} : vector<2x96xf32> to vector<2x32xf32>
    %99 = vector.extract_strided_slice %79 {offsets = [0, 64], sizes = [2, 32], strides = [1, 1]} : vector<2x96xf32> to vector<2x32xf32>
    %100 = arith.mulf %89, %99 : vector<2x32xf32>
    %101 = arith.addf %98, %100 : vector<2x32xf32>
    %102 = math.tanh %101 : vector<2x32xf32>
    %cst_28 = arith.constant 1.000000e+00 : f32
    %103 = vector.broadcast %cst_28 : f32 to vector<2x32xf32>
    %104 = arith.subf %103, %97 : vector<2x32xf32>
    %105 = arith.mulf %104, %102 : vector<2x32xf32>
    %106 = arith.mulf %97, %75 : vector<2x32xf32>
    %107 = arith.addf %105, %106 : vector<2x32xf32>
    %108 = arith.truncf %107 : vector<2x32xf32> to vector<2x32xbf16>
    %cst_29 = arith.constant dense<0.000000e+00> : vector<2x96xf32>
    %109 = tpu.matmul %108, %41, %cst_29 {dimension_numbers = #tpu.dot_dimension_numbers<[1], [0], [0], [1], [0, 0, 1, 1], [], []>} : vector<2x32xbf16>, vector<32x96xbf16>, vector<2x96xf32> -> vector<2x96xf32>
    %110 = vector.broadcast %42 : vector<1x96xf32> to vector<2x96xf32>
    %111 = arith.addf %109, %110 : vector<2x96xf32>
    %112 = vector.extract_strided_slice %40 {offsets = [0, 2, 0], sizes = [2, 1, 96], strides = [1, 1, 1]} : vector<2x8x96xf32> to vector<2x1x96xf32>
    %113 = vector.shape_cast %112 : vector<2x1x96xf32> to vector<2x96xf32>
    %114 = vector.extract_strided_slice %113 {offsets = [0, 0], sizes = [2, 32], strides = [1, 1]} : vector<2x96xf32> to vector<2x32xf32>
    %115 = vector.extract_strided_slice %111 {offsets = [0, 0], sizes = [2, 32], strides = [1, 1]} : vector<2x96xf32> to vector<2x32xf32>
    %116 = arith.addf %114, %115 : vector<2x32xf32>
    %117 = arith.negf %116 : vector<2x32xf32>
    %118 = math.exp %117 : vector<2x32xf32>
    %cst_30 = arith.constant 1.000000e+00 : f32
    %119 = vector.broadcast %cst_30 : f32 to vector<2x32xf32>
    %120 = arith.addf %119, %118 : vector<2x32xf32>
    %121 = arith.divf %119, %120 : vector<2x32xf32>
    %122 = vector.extract_strided_slice %113 {offsets = [0, 32], sizes = [2, 32], strides = [1, 1]} : vector<2x96xf32> to vector<2x32xf32>
    %123 = vector.extract_strided_slice %111 {offsets = [0, 32], sizes = [2, 32], strides = [1, 1]} : vector<2x96xf32> to vector<2x32xf32>
    %124 = arith.addf %122, %123 : vector<2x32xf32>
    %125 = arith.negf %124 : vector<2x32xf32>
    %126 = math.exp %125 : vector<2x32xf32>
    %cst_31 = arith.constant 1.000000e+00 : f32
    %127 = vector.broadcast %cst_31 : f32 to vector<2x32xf32>
    %128 = arith.addf %127, %126 : vector<2x32xf32>
    %129 = arith.divf %127, %128 : vector<2x32xf32>
    %130 = vector.extract_strided_slice %113 {offsets = [0, 64], sizes = [2, 32], strides = [1, 1]} : vector<2x96xf32> to vector<2x32xf32>
    %131 = vector.extract_strided_slice %111 {offsets = [0, 64], sizes = [2, 32], strides = [1, 1]} : vector<2x96xf32> to vector<2x32xf32>
    %132 = arith.mulf %121, %131 : vector<2x32xf32>
    %133 = arith.addf %130, %132 : vector<2x32xf32>
    %134 = math.tanh %133 : vector<2x32xf32>
    %cst_32 = arith.constant 1.000000e+00 : f32
    %135 = vector.broadcast %cst_32 : f32 to vector<2x32xf32>
    %136 = arith.subf %135, %129 : vector<2x32xf32>
    %137 = arith.mulf %136, %134 : vector<2x32xf32>
    %138 = arith.mulf %129, %107 : vector<2x32xf32>
    %139 = arith.addf %137, %138 : vector<2x32xf32>
    %140 = arith.truncf %139 : vector<2x32xf32> to vector<2x32xbf16>
    %cst_33 = arith.constant dense<0.000000e+00> : vector<2x96xf32>
    %141 = tpu.matmul %140, %41, %cst_33 {dimension_numbers = #tpu.dot_dimension_numbers<[1], [0], [0], [1], [0, 0, 1, 1], [], []>} : vector<2x32xbf16>, vector<32x96xbf16>, vector<2x96xf32> -> vector<2x96xf32>
    %142 = vector.broadcast %42 : vector<1x96xf32> to vector<2x96xf32>
    %143 = arith.addf %141, %142 : vector<2x96xf32>
    %144 = vector.extract_strided_slice %40 {offsets = [0, 3, 0], sizes = [2, 1, 96], strides = [1, 1, 1]} : vector<2x8x96xf32> to vector<2x1x96xf32>
    %145 = vector.shape_cast %144 : vector<2x1x96xf32> to vector<2x96xf32>
    %146 = vector.extract_strided_slice %145 {offsets = [0, 0], sizes = [2, 32], strides = [1, 1]} : vector<2x96xf32> to vector<2x32xf32>
    %147 = vector.extract_strided_slice %143 {offsets = [0, 0], sizes = [2, 32], strides = [1, 1]} : vector<2x96xf32> to vector<2x32xf32>
    %148 = arith.addf %146, %147 : vector<2x32xf32>
    %149 = arith.negf %148 : vector<2x32xf32>
    %150 = math.exp %149 : vector<2x32xf32>
    %cst_34 = arith.constant 1.000000e+00 : f32
    %151 = vector.broadcast %cst_34 : f32 to vector<2x32xf32>
    %152 = arith.addf %151, %150 : vector<2x32xf32>
    %153 = arith.divf %151, %152 : vector<2x32xf32>
    %154 = vector.extract_strided_slice %145 {offsets = [0, 32], sizes = [2, 32], strides = [1, 1]} : vector<2x96xf32> to vector<2x32xf32>
    %155 = vector.extract_strided_slice %143 {offsets = [0, 32], sizes = [2, 32], strides = [1, 1]} : vector<2x96xf32> to vector<2x32xf32>
    %156 = arith.addf %154, %155 : vector<2x32xf32>
    %157 = arith.negf %156 : vector<2x32xf32>
    %158 = math.exp %157 : vector<2x32xf32>
    %cst_35 = arith.constant 1.000000e+00 : f32
    %159 = vector.broadcast %cst_35 : f32 to vector<2x32xf32>
    %160 = arith.addf %159, %158 : vector<2x32xf32>
    %161 = arith.divf %159, %160 : vector<2x32xf32>
    %162 = vector.extract_strided_slice %145 {offsets = [0, 64], sizes = [2, 32], strides = [1, 1]} : vector<2x96xf32> to vector<2x32xf32>
    %163 = vector.extract_strided_slice %143 {offsets = [0, 64], sizes = [2, 32], strides = [1, 1]} : vector<2x96xf32> to vector<2x32xf32>
    %164 = arith.mulf %153, %163 : vector<2x32xf32>
    %165 = arith.addf %162, %164 : vector<2x32xf32>
    %166 = math.tanh %165 : vector<2x32xf32>
    %cst_36 = arith.constant 1.000000e+00 : f32
    %167 = vector.broadcast %cst_36 : f32 to vector<2x32xf32>
    %168 = arith.subf %167, %161 : vector<2x32xf32>
    %169 = arith.mulf %168, %166 : vector<2x32xf32>
    %170 = arith.mulf %161, %139 : vector<2x32xf32>
    %171 = arith.addf %169, %170 : vector<2x32xf32>
    %172 = arith.truncf %171 : vector<2x32xf32> to vector<2x32xbf16>
    %cst_37 = arith.constant dense<0.000000e+00> : vector<2x96xf32>
    %173 = tpu.matmul %172, %41, %cst_37 {dimension_numbers = #tpu.dot_dimension_numbers<[1], [0], [0], [1], [0, 0, 1, 1], [], []>} : vector<2x32xbf16>, vector<32x96xbf16>, vector<2x96xf32> -> vector<2x96xf32>
    %174 = vector.broadcast %42 : vector<1x96xf32> to vector<2x96xf32>
    %175 = arith.addf %173, %174 : vector<2x96xf32>
    %176 = vector.extract_strided_slice %40 {offsets = [0, 4, 0], sizes = [2, 1, 96], strides = [1, 1, 1]} : vector<2x8x96xf32> to vector<2x1x96xf32>
    %177 = vector.shape_cast %176 : vector<2x1x96xf32> to vector<2x96xf32>
    %178 = vector.extract_strided_slice %177 {offsets = [0, 0], sizes = [2, 32], strides = [1, 1]} : vector<2x96xf32> to vector<2x32xf32>
    %179 = vector.extract_strided_slice %175 {offsets = [0, 0], sizes = [2, 32], strides = [1, 1]} : vector<2x96xf32> to vector<2x32xf32>
    %180 = arith.addf %178, %179 : vector<2x32xf32>
    %181 = arith.negf %180 : vector<2x32xf32>
    %182 = math.exp %181 : vector<2x32xf32>
    %cst_38 = arith.constant 1.000000e+00 : f32
    %183 = vector.broadcast %cst_38 : f32 to vector<2x32xf32>
    %184 = arith.addf %183, %182 : vector<2x32xf32>
    %185 = arith.divf %183, %184 : vector<2x32xf32>
    %186 = vector.extract_strided_slice %177 {offsets = [0, 32], sizes = [2, 32], strides = [1, 1]} : vector<2x96xf32> to vector<2x32xf32>
    %187 = vector.extract_strided_slice %175 {offsets = [0, 32], sizes = [2, 32], strides = [1, 1]} : vector<2x96xf32> to vector<2x32xf32>
    %188 = arith.addf %186, %187 : vector<2x32xf32>
    %189 = arith.negf %188 : vector<2x32xf32>
    %190 = math.exp %189 : vector<2x32xf32>
    %cst_39 = arith.constant 1.000000e+00 : f32
    %191 = vector.broadcast %cst_39 : f32 to vector<2x32xf32>
    %192 = arith.addf %191, %190 : vector<2x32xf32>
    %193 = arith.divf %191, %192 : vector<2x32xf32>
    %194 = vector.extract_strided_slice %177 {offsets = [0, 64], sizes = [2, 32], strides = [1, 1]} : vector<2x96xf32> to vector<2x32xf32>
    %195 = vector.extract_strided_slice %175 {offsets = [0, 64], sizes = [2, 32], strides = [1, 1]} : vector<2x96xf32> to vector<2x32xf32>
    %196 = arith.mulf %185, %195 : vector<2x32xf32>
    %197 = arith.addf %194, %196 : vector<2x32xf32>
    %198 = math.tanh %197 : vector<2x32xf32>
    %cst_40 = arith.constant 1.000000e+00 : f32
    %199 = vector.broadcast %cst_40 : f32 to vector<2x32xf32>
    %200 = arith.subf %199, %193 : vector<2x32xf32>
    %201 = arith.mulf %200, %198 : vector<2x32xf32>
    %202 = arith.mulf %193, %171 : vector<2x32xf32>
    %203 = arith.addf %201, %202 : vector<2x32xf32>
    %204 = arith.truncf %203 : vector<2x32xf32> to vector<2x32xbf16>
    %cst_41 = arith.constant dense<0.000000e+00> : vector<2x96xf32>
    %205 = tpu.matmul %204, %41, %cst_41 {dimension_numbers = #tpu.dot_dimension_numbers<[1], [0], [0], [1], [0, 0, 1, 1], [], []>} : vector<2x32xbf16>, vector<32x96xbf16>, vector<2x96xf32> -> vector<2x96xf32>
    %206 = vector.broadcast %42 : vector<1x96xf32> to vector<2x96xf32>
    %207 = arith.addf %205, %206 : vector<2x96xf32>
    %208 = vector.extract_strided_slice %40 {offsets = [0, 5, 0], sizes = [2, 1, 96], strides = [1, 1, 1]} : vector<2x8x96xf32> to vector<2x1x96xf32>
    %209 = vector.shape_cast %208 : vector<2x1x96xf32> to vector<2x96xf32>
    %210 = vector.extract_strided_slice %209 {offsets = [0, 0], sizes = [2, 32], strides = [1, 1]} : vector<2x96xf32> to vector<2x32xf32>
    %211 = vector.extract_strided_slice %207 {offsets = [0, 0], sizes = [2, 32], strides = [1, 1]} : vector<2x96xf32> to vector<2x32xf32>
    %212 = arith.addf %210, %211 : vector<2x32xf32>
    %213 = arith.negf %212 : vector<2x32xf32>
    %214 = math.exp %213 : vector<2x32xf32>
    %cst_42 = arith.constant 1.000000e+00 : f32
    %215 = vector.broadcast %cst_42 : f32 to vector<2x32xf32>
    %216 = arith.addf %215, %214 : vector<2x32xf32>
    %217 = arith.divf %215, %216 : vector<2x32xf32>
    %218 = vector.extract_strided_slice %209 {offsets = [0, 32], sizes = [2, 32], strides = [1, 1]} : vector<2x96xf32> to vector<2x32xf32>
    %219 = vector.extract_strided_slice %207 {offsets = [0, 32], sizes = [2, 32], strides = [1, 1]} : vector<2x96xf32> to vector<2x32xf32>
    %220 = arith.addf %218, %219 : vector<2x32xf32>
    %221 = arith.negf %220 : vector<2x32xf32>
    %222 = math.exp %221 : vector<2x32xf32>
    %cst_43 = arith.constant 1.000000e+00 : f32
    %223 = vector.broadcast %cst_43 : f32 to vector<2x32xf32>
    %224 = arith.addf %223, %222 : vector<2x32xf32>
    %225 = arith.divf %223, %224 : vector<2x32xf32>
    %226 = vector.extract_strided_slice %209 {offsets = [0, 64], sizes = [2, 32], strides = [1, 1]} : vector<2x96xf32> to vector<2x32xf32>
    %227 = vector.extract_strided_slice %207 {offsets = [0, 64], sizes = [2, 32], strides = [1, 1]} : vector<2x96xf32> to vector<2x32xf32>
    %228 = arith.mulf %217, %227 : vector<2x32xf32>
    %229 = arith.addf %226, %228 : vector<2x32xf32>
    %230 = math.tanh %229 : vector<2x32xf32>
    %cst_44 = arith.constant 1.000000e+00 : f32
    %231 = vector.broadcast %cst_44 : f32 to vector<2x32xf32>
    %232 = arith.subf %231, %225 : vector<2x32xf32>
    %233 = arith.mulf %232, %230 : vector<2x32xf32>
    %234 = arith.mulf %225, %203 : vector<2x32xf32>
    %235 = arith.addf %233, %234 : vector<2x32xf32>
    %236 = arith.truncf %235 : vector<2x32xf32> to vector<2x32xbf16>
    %cst_45 = arith.constant dense<0.000000e+00> : vector<2x96xf32>
    %237 = tpu.matmul %236, %41, %cst_45 {dimension_numbers = #tpu.dot_dimension_numbers<[1], [0], [0], [1], [0, 0, 1, 1], [], []>} : vector<2x32xbf16>, vector<32x96xbf16>, vector<2x96xf32> -> vector<2x96xf32>
    %238 = vector.broadcast %42 : vector<1x96xf32> to vector<2x96xf32>
    %239 = arith.addf %237, %238 : vector<2x96xf32>
    %240 = vector.extract_strided_slice %40 {offsets = [0, 6, 0], sizes = [2, 1, 96], strides = [1, 1, 1]} : vector<2x8x96xf32> to vector<2x1x96xf32>
    %241 = vector.shape_cast %240 : vector<2x1x96xf32> to vector<2x96xf32>
    %242 = vector.extract_strided_slice %241 {offsets = [0, 0], sizes = [2, 32], strides = [1, 1]} : vector<2x96xf32> to vector<2x32xf32>
    %243 = vector.extract_strided_slice %239 {offsets = [0, 0], sizes = [2, 32], strides = [1, 1]} : vector<2x96xf32> to vector<2x32xf32>
    %244 = arith.addf %242, %243 : vector<2x32xf32>
    %245 = arith.negf %244 : vector<2x32xf32>
    %246 = math.exp %245 : vector<2x32xf32>
    %cst_46 = arith.constant 1.000000e+00 : f32
    %247 = vector.broadcast %cst_46 : f32 to vector<2x32xf32>
    %248 = arith.addf %247, %246 : vector<2x32xf32>
    %249 = arith.divf %247, %248 : vector<2x32xf32>
    %250 = vector.extract_strided_slice %241 {offsets = [0, 32], sizes = [2, 32], strides = [1, 1]} : vector<2x96xf32> to vector<2x32xf32>
    %251 = vector.extract_strided_slice %239 {offsets = [0, 32], sizes = [2, 32], strides = [1, 1]} : vector<2x96xf32> to vector<2x32xf32>
    %252 = arith.addf %250, %251 : vector<2x32xf32>
    %253 = arith.negf %252 : vector<2x32xf32>
    %254 = math.exp %253 : vector<2x32xf32>
    %cst_47 = arith.constant 1.000000e+00 : f32
    %255 = vector.broadcast %cst_47 : f32 to vector<2x32xf32>
    %256 = arith.addf %255, %254 : vector<2x32xf32>
    %257 = arith.divf %255, %256 : vector<2x32xf32>
    %258 = vector.extract_strided_slice %241 {offsets = [0, 64], sizes = [2, 32], strides = [1, 1]} : vector<2x96xf32> to vector<2x32xf32>
    %259 = vector.extract_strided_slice %239 {offsets = [0, 64], sizes = [2, 32], strides = [1, 1]} : vector<2x96xf32> to vector<2x32xf32>
    %260 = arith.mulf %249, %259 : vector<2x32xf32>
    %261 = arith.addf %258, %260 : vector<2x32xf32>
    %262 = math.tanh %261 : vector<2x32xf32>
    %cst_48 = arith.constant 1.000000e+00 : f32
    %263 = vector.broadcast %cst_48 : f32 to vector<2x32xf32>
    %264 = arith.subf %263, %257 : vector<2x32xf32>
    %265 = arith.mulf %264, %262 : vector<2x32xf32>
    %266 = arith.mulf %257, %235 : vector<2x32xf32>
    %267 = arith.addf %265, %266 : vector<2x32xf32>
    %268 = arith.truncf %267 : vector<2x32xf32> to vector<2x32xbf16>
    %cst_49 = arith.constant dense<0.000000e+00> : vector<2x96xf32>
    %269 = tpu.matmul %268, %41, %cst_49 {dimension_numbers = #tpu.dot_dimension_numbers<[1], [0], [0], [1], [0, 0, 1, 1], [], []>} : vector<2x32xbf16>, vector<32x96xbf16>, vector<2x96xf32> -> vector<2x96xf32>
    %270 = vector.broadcast %42 : vector<1x96xf32> to vector<2x96xf32>
    %271 = arith.addf %269, %270 : vector<2x96xf32>
    %272 = vector.extract_strided_slice %40 {offsets = [0, 7, 0], sizes = [2, 1, 96], strides = [1, 1, 1]} : vector<2x8x96xf32> to vector<2x1x96xf32>
    %273 = vector.shape_cast %272 : vector<2x1x96xf32> to vector<2x96xf32>
    %274 = vector.extract_strided_slice %273 {offsets = [0, 0], sizes = [2, 32], strides = [1, 1]} : vector<2x96xf32> to vector<2x32xf32>
    %275 = vector.extract_strided_slice %271 {offsets = [0, 0], sizes = [2, 32], strides = [1, 1]} : vector<2x96xf32> to vector<2x32xf32>
    %276 = arith.addf %274, %275 : vector<2x32xf32>
    %277 = arith.negf %276 : vector<2x32xf32>
    %278 = math.exp %277 : vector<2x32xf32>
    %cst_50 = arith.constant 1.000000e+00 : f32
    %279 = vector.broadcast %cst_50 : f32 to vector<2x32xf32>
    %280 = arith.addf %279, %278 : vector<2x32xf32>
    %281 = arith.divf %279, %280 : vector<2x32xf32>
    %282 = vector.extract_strided_slice %273 {offsets = [0, 32], sizes = [2, 32], strides = [1, 1]} : vector<2x96xf32> to vector<2x32xf32>
    %283 = vector.extract_strided_slice %271 {offsets = [0, 32], sizes = [2, 32], strides = [1, 1]} : vector<2x96xf32> to vector<2x32xf32>
    %284 = arith.addf %282, %283 : vector<2x32xf32>
    %285 = arith.negf %284 : vector<2x32xf32>
    %286 = math.exp %285 : vector<2x32xf32>
    %cst_51 = arith.constant 1.000000e+00 : f32
    %287 = vector.broadcast %cst_51 : f32 to vector<2x32xf32>
    %288 = arith.addf %287, %286 : vector<2x32xf32>
    %289 = arith.divf %287, %288 : vector<2x32xf32>
    %290 = vector.extract_strided_slice %273 {offsets = [0, 64], sizes = [2, 32], strides = [1, 1]} : vector<2x96xf32> to vector<2x32xf32>
    %291 = vector.extract_strided_slice %271 {offsets = [0, 64], sizes = [2, 32], strides = [1, 1]} : vector<2x96xf32> to vector<2x32xf32>
    %292 = arith.mulf %281, %291 : vector<2x32xf32>
    %293 = arith.addf %290, %292 : vector<2x32xf32>
    %294 = math.tanh %293 : vector<2x32xf32>
    %cst_52 = arith.constant 1.000000e+00 : f32
    %295 = vector.broadcast %cst_52 : f32 to vector<2x32xf32>
    %296 = arith.subf %295, %289 : vector<2x32xf32>
    %297 = arith.mulf %296, %294 : vector<2x32xf32>
    %298 = arith.mulf %289, %267 : vector<2x32xf32>
    %299 = arith.addf %297, %298 : vector<2x32xf32>
    %300 = tpu.concatenate %75, %107, %139, %171, %203, %235, %267, %299 in 0 : vector<2x32xf32>, vector<2x32xf32>, vector<2x32xf32>, vector<2x32xf32>, vector<2x32xf32>, vector<2x32xf32>, vector<2x32xf32>, vector<2x32xf32> -> vector<16x32xf32>
    %301 = arith.truncf %300 : vector<16x32xf32> to vector<16x32xbf16>
    %c192 = arith.constant 192 : index
    %c0_53 = arith.constant 0 : index
    %302 = vector.load %arg2[%c192, %c0_53] : memref<304x128xbf16, #tpu.memory_space<vmem>>, vector<32x2xbf16>
    %cst_54 = arith.constant dense<0.000000e+00> : vector<16x2xf32>
    %303 = tpu.matmul %301, %302, %cst_54 {dimension_numbers = #tpu.dot_dimension_numbers<[1], [0], [0], [1], [0, 0, 1, 1], [], []>} : vector<16x32xbf16>, vector<32x2xbf16>, vector<16x2xf32> -> vector<16x2xf32>
    %c4 = arith.constant 4 : index
    %c0_55 = arith.constant 0 : index
    %304 = vector.load %arg3[%c4, %c0_55] : memref<8x128xf32, #tpu.memory_space<vmem>>, vector<1x2xf32>
    %305 = vector.broadcast %304 : vector<1x2xf32> to vector<16x2xf32>
    %306 = arith.addf %303, %305 : vector<16x2xf32>
    %307 = vector.shape_cast %306 : vector<16x2xf32> to vector<8x2x2xf32>
    %cst_56 = arith.constant dense<0xFF800000> : vector<2x2xf32>
    %308 = vector.multi_reduction <maximumf>, %307, %cst_56 [0] : vector<8x2x2xf32> to vector<2x2xf32>
    %309 = vector.shape_cast %308 : vector<2x2xf32> to vector<1x2x2xf32>
    %310 = vector.broadcast %309 : vector<1x2x2xf32> to vector<8x2x2xf32>
    %311 = arith.subf %307, %310 : vector<8x2x2xf32>
    %312 = math.exp %311 : vector<8x2x2xf32>
    %cst_57 = arith.constant dense<0.000000e+00> : vector<2x2xf32>
    %313 = vector.multi_reduction <add>, %312, %cst_57 [0] : vector<8x2x2xf32> to vector<2x2xf32>
    %314 = vector.shape_cast %313 : vector<2x2xf32> to vector<1x2x2xf32>
    %315 = vector.broadcast %314 : vector<1x2x2xf32> to vector<8x2x2xf32>
    %316 = arith.divf %312, %315 : vector<8x2x2xf32>
    %317 = vector.extract_strided_slice %316 {offsets = [0, 0, 0], sizes = [8, 2, 1], strides = [1, 1, 1]} : vector<8x2x2xf32> to vector<8x2x1xf32>
    %318 = vector.extract_strided_slice %316 {offsets = [0, 0, 1], sizes = [8, 2, 1], strides = [1, 1, 1]} : vector<8x2x2xf32> to vector<8x2x1xf32>
    %319 = arith.addf %317, %318 : vector<8x2x1xf32>
    %cst_58 = arith.constant 5.000000e-01 : f32
    %320 = vector.broadcast %cst_58 : f32 to vector<8x2x1xf32>
    %321 = arith.mulf %320, %319 : vector<8x2x1xf32>
    %322 = vector.shape_cast %300 : vector<16x32xf32> to vector<8x2x32xf32>
    %323 = vector.broadcast %321 : vector<8x2x1xf32> to vector<8x2x32xf32>
    %324 = arith.mulf %323, %322 : vector<8x2x32xf32>
    %cst_59 = arith.constant dense<0.000000e+00> : vector<2x32xf32>
    %325 = vector.multi_reduction <add>, %324, %cst_59 [0] : vector<8x2x32xf32> to vector<2x32xf32>
    %326 = arith.truncf %325 : vector<2x32xf32> to vector<2x32xbf16>
    %c224 = arith.constant 224 : index
    %c0_60 = arith.constant 0 : index
    %327 = vector.load %arg2[%c224, %c0_60] : memref<304x128xbf16, #tpu.memory_space<vmem>>, vector<32x32xbf16>
    %cst_61 = arith.constant dense<0.000000e+00> : vector<2x32xf32>
    %328 = tpu.matmul %326, %327, %cst_61 {dimension_numbers = #tpu.dot_dimension_numbers<[1], [0], [0], [1], [0, 0, 1, 1], [], []>} : vector<2x32xbf16>, vector<32x32xbf16>, vector<2x32xf32> -> vector<2x32xf32>
    %c5 = arith.constant 5 : index
    %c0_62 = arith.constant 0 : index
    %329 = vector.load %arg3[%c5, %c0_62] : memref<8x128xf32, #tpu.memory_space<vmem>>, vector<1x32xf32>
    %330 = vector.broadcast %329 : vector<1x32xf32> to vector<2x32xf32>
    %331 = arith.addf %328, %330 : vector<2x32xf32>
    %cst_63 = arith.constant 0.000000e+00 : f32
    %332 = vector.broadcast %cst_63 : f32 to vector<2x32xf32>
    %333 = arith.cmpf ogt, %331, %332 : vector<2x32xf32>
    %cst_64 = arith.constant 1.000000e-01 : f32
    %334 = vector.broadcast %cst_64 : f32 to vector<2x32xf32>
    %335 = arith.mulf %334, %331 : vector<2x32xf32>
    %336 = arith.select %333, %331, %335 : vector<2x32xi1>, vector<2x32xf32>
    %337 = arith.truncf %336 : vector<2x32xf32> to vector<2x32xbf16>
    %c256 = arith.constant 256 : index
    %c0_65 = arith.constant 0 : index
    %338 = vector.load %arg2[%c256, %c0_65] : memref<304x128xbf16, #tpu.memory_space<vmem>>, vector<32x16xbf16>
    %cst_66 = arith.constant dense<0.000000e+00> : vector<2x16xf32>
    %339 = tpu.matmul %337, %338, %cst_66 {dimension_numbers = #tpu.dot_dimension_numbers<[1], [0], [0], [1], [0, 0, 1, 1], [], []>} : vector<2x32xbf16>, vector<32x16xbf16>, vector<2x16xf32> -> vector<2x16xf32>
    %c6 = arith.constant 6 : index
    %c0_67 = arith.constant 0 : index
    %340 = vector.load %arg3[%c6, %c0_67] : memref<8x128xf32, #tpu.memory_space<vmem>>, vector<1x16xf32>
    %341 = vector.broadcast %340 : vector<1x16xf32> to vector<2x16xf32>
    %342 = arith.addf %339, %341 : vector<2x16xf32>
    %cst_68 = arith.constant 0.000000e+00 : f32
    %343 = vector.broadcast %cst_68 : f32 to vector<2x16xf32>
    %344 = arith.cmpf ogt, %342, %343 : vector<2x16xf32>
    %cst_69 = arith.constant 1.000000e-01 : f32
    %345 = vector.broadcast %cst_69 : f32 to vector<2x16xf32>
    %346 = arith.mulf %345, %342 : vector<2x16xf32>
    %347 = arith.select %344, %342, %346 : vector<2x16xi1>, vector<2x16xf32>
    %348 = arith.truncf %347 : vector<2x16xf32> to vector<2x16xbf16>
    %c288 = arith.constant 288 : index
    %c0_70 = arith.constant 0 : index
    %349 = vector.load %arg2[%c288, %c0_70] : memref<304x128xbf16, #tpu.memory_space<vmem>>, vector<16x1xbf16>
    %cst_71 = arith.constant dense<0.000000e+00> : vector<2x1xf32>
    %350 = tpu.matmul %348, %349, %cst_71 {dimension_numbers = #tpu.dot_dimension_numbers<[1], [0], [0], [1], [0, 0, 1, 1], [], []>} : vector<2x16xbf16>, vector<16x1xbf16>, vector<2x1xf32> -> vector<2x1xf32>
    %c7 = arith.constant 7 : index
    %c0_72 = arith.constant 0 : index
    %351 = vector.load %arg3[%c7, %c0_72] : memref<8x128xf32, #tpu.memory_space<vmem>>, vector<1x1xf32>
    %352 = vector.broadcast %351 : vector<1x1xf32> to vector<2x1xf32>
    %353 = arith.addf %350, %352 : vector<2x1xf32>
    %c0_73 = arith.constant 0 : index
    %c0_74 = arith.constant 0 : index
    %c0_75 = arith.constant 0 : index
    %354 = vector.load %arg4[%c0_73, %c0_74, %c0_75] : memref<1x2x1xf32, #tpu.memory_space<vmem>>, vector<1x2x1xf32>
    %355 = vector.shape_cast %354 : vector<1x2x1xf32> to vector<2x1xf32>
    %356 = vector.shape_cast %353 : vector<2x1xf32> to vector<1x2x1xf32>
    tpu.vector_store %arg4[%c0_73, %c0_74, %c0_75], %356 {strides = array<i32>} : memref<1x2x1xf32, #tpu.memory_space<vmem>>, vector<1x2x1xf32>,
    return
  }
  func.func @transform_0(%arg0: i32) -> (i32, i32, i32, i32) {
    %c0_i32 = arith.constant 0 : i32
    %c0_i32_0 = arith.constant 0 : i32
    %c0_i32_1 = arith.constant 0 : i32
    %c0_i32_2 = arith.constant 0 : i32
    return %arg0, %c0_i32, %c0_i32_0, %c0_i32_1 : i32, i32, i32, i32
  }
  func.func @transform_1(%arg0: i32) -> (i32, i32) {
    %c0_i32 = arith.constant 0 : i32
    %c0_i32_0 = arith.constant 0 : i32
    %c0_i32_1 = arith.constant 0 : i32
    return %c0_i32, %c0_i32_0 : i32, i32
  }
  func.func @transform_2(%arg0: i32) -> (i32, i32) {
    %c0_i32 = arith.constant 0 : i32
    %c0_i32_0 = arith.constant 0 : i32
    %c0_i32_1 = arith.constant 0 : i32
    return %c0_i32, %c0_i32_0 : i32, i32
  }
  func.func @transform_3(%arg0: i32) -> (i32, i32, i32) {
    %c0_i32 = arith.constant 0 : i32
    %c0_i32_0 = arith.constant 0 : i32
    %c0_i32_1 = arith.constant 0 : i32
    return %arg0, %c0_i32, %c0_i32_0 : i32, i32, i32
  }
}

</mosaic_0001>

<bundles_post_ra>
// kernel: tpu_custom_call.1
= control target key start
LH: loop header
LB: loop body
LE: loop exit
PB: predicated region body
PF: predicated region fallthrough
CT: control target
= control target key end

     0   :  { %8 = vsyncpa [#allocation3], 0  ;;  %s2737_s0 = inlined_call_operand.hbm [shape: bf16[1,2,16,16], index: 0, kind: input, shape index: {}]   ;;  %s2738_s1 = inlined_call_operand.hbm [shape: bf16[304,128], index: 1, kind: input, shape index: {}]   ;;  %s2739_s2 = inlined_call_operand.hbm [shape: f32[8,128], index: 2, kind: input, shape index: {}]   ;;  %s2740_s3 = inlined_call_operand.vmem [shape: f32[1,2,1], index: 3, kind: output, shape index: {}]  }
   0x1   :  { %9 = vsyncpa [#allocation5], 0  ;;  %s27_s14 = sshll.u32 %s2738_s1, 4  ;;  %s2313_s15 = smov [#allocation4]   ;;  %s28_s14 = int_to_ptr.hbm [resolvable:$true] %s27_s14 }
   0x2   :  { %s29_s16 = sshll.u32 %s2313_s15, 4  ;;  %s14_s19 = sshll.u32 %s2737_s0, 4  ;;  %s30_s16 = int_to_ptr.vmem [resolvable:$true] %s29_s16  ;;  %s15_s19 = int_to_ptr.hbm [resolvable:$true] %s14_s19 }
   0x3   :  { %s2314_s20 = smov 64   ;;  %s2315_s21 = smov 4  }
   0x4   :  { %35 = dma.hbm_to_vmem [thread:$0]  %s28_s14, 2432, %s30_s16, [#allocation5], %s2314_s20, %s2314_s20, %s2315_s21  }
   0x5   :  { %s2316_s22 = smov [#allocation2]   ;;  %s41_s1 = sshll.u32 %s2739_s2, 4  ;;  %s42_s1 = int_to_ptr.hbm [resolvable:$true] %s41_s1 }
   0x6   :  { %s16_s23 = sshll.u32 %s2316_s22, 4  ;;  %s2317_s26 = smov [#allocation6]   ;;  %s17_s23 = int_to_ptr.vmem [resolvable:$true] %s16_s23 }
   0x7   :  { %22 = dma.hbm_to_vmem [thread:$0]  %s15_s19, 256, %s17_s23, [#allocation3], %s2314_s20, %s2314_s20, %s2315_s21  }
   0x8   :  { %s43_s27 = sshll.u32 %s2317_s26, 4  ;;  %s44_s27 = int_to_ptr.vmem [resolvable:$true] %s43_s27 }
   0x9   :  { %46 = dma.hbm_to_vmem [thread:$0]  %s42_s1, 128, %s44_s27, [#allocation5]  }
   0xa   :  { %2309 = dma.done.wait [#allocation3], 256  }
   0xb   :  { %2310 = vsyncadd [#allocation3], 4294967040 }
   0xc   :  { %2311 = dma.done.wait [#allocation5], 2560  }
   0xd   :  { %2312 = vsyncadd [#allocation5], 4294964736  ;;  %v2078_v0 = vld [vmem:[#allocation2] sm:$0xff]  ;;  %vm92_vm0 = vcmask 1040384   ;;  %vm93_vm1 = vsmask.f32 256 }
   0xe   :  { %v2079_v1 = vld [vmem:[#allocation2 + $0x8] sm:$0xff]  ;;  %v2082_v2 = vld [vmem:[#allocation4 + $0x10] sm:$0xff]  ;;  %v75_v3 = vshrl.u32 %v2078_v0, 16  ;;  %v78_v4 = vshll.u32 %v2078_v0, 16  ;;  %vm2359_vm2 = vmand %vm92_vm0, %vm93_vm1  ;;  %vm99_vm3 = vsmask.f32 7424 }
   0xf   :  { %v82_v5 = vshrl.u32 %v2079_v1, 16  ;;  %v85_v6 = vshll.u32 %v2079_v1, 16  ;;  %189 = vmatpush.bf16.msra.mxu0 %v2082_v2  ;;  %s2318_s0 = smov 16   ;;  %vm132_vm4 = vcmask 1046528   ;;  %s2319_s2 = smov 32   ;;  %v2081_v36 = vld [vmem:[#allocation4 + $0x8] sm:$0xff] }
  0x10   :  { %v77_v7 = vrot.slane %v75_v3, 7  ;;  %v2080_v37 = vld [vmem:[#allocation4] sm:$0xff]  ;;  %vm2741_vm5 = vcmask 130048   ;;  %vm148_vm6 = vcmask 261120   ;;  %vm179_vm7 = vcmask 392192   ;;  %s2320_s28 = smov 24  }
  0x11   :  { %v84_v8 = vrot.slane %v82_v5, 7  ;;  %v2114_v46 = vld [vmem:[#allocation6] ss:$0 sm:$0xff]  ;;  %vm337_vm8 = vcmask 1043456   ;;  %s2321_s29 = smov 48   ;;  %vm285_vm9 = vcmask 195584  }
  0x12   :  { %v80_v10 = vor.u32 %v78_v4, %v77_v7  ;;  %v97_v11 = vsel %vm2359_vm2, %v77_v7, 0  ;;  %v302_v59 = vld [vmem:[#allocation4 + $0x38] sm:$0xf]  ;;  %vm332_vm10 = vcmask 588800   ;;  %vm392_vm11 = vcmask 254976   ;;  %s2323_s30 = smov 96  }
  0x13   :  { %v87_v12 = vor.u32 %v85_v6, %v84_v8  ;;  %v98_v13 = vsel %vm2359_vm2, %v84_v8, 0  ;;  %v108_v14 = vshll.u32 %v97_v11, 16  ;;  %v134_v31 = vrot.slane %v97_v11, 1  ;;  %190 = vmatpush.bf16.msra.mxu0 %v2081_v36  ;;  %v2086_v6 = vld [vmem:[#allocation4 + $0x30] sm:$0xff]  ;;  %v2083_v9 = vld [vmem:[#allocation4 + $0x18] sm:$0xff]  ;;  %s2324_s4 = smov 127  }
  0x14   :  { %v95_v15 = vsel %vm2359_vm2, 0, %v80_v10  ;;  %v120_v17 = vshll.u32 %v98_v13, 16  ;;  %v137_v33 = vrot.slane %v98_v13, 1  ;;  %v322_v60 = vunpack.c.l.b16 %v302_v59 }
  0x15   :  { %v96_v16 = vsel %vm2359_vm2, 0, %v87_v12  ;;  %v101_v18 = vshrl.u32 %v95_v15, 16  ;;  %v103_v19 = vshll.u32 %v95_v15, 16  ;;  %v110_v23 = vrot.slane %v108_v14, 1 }
  0x16   :  { %v113_v20 = vshrl.u32 %v96_v16, 16  ;;  %v115_v21 = vshll.u32 %v96_v16, 16  ;;  %v122_v25 = vrot.slane %v120_v17, 1  ;;  %v133_v30 = vrot.slane %v95_v15, 1 }
  0x17   :  { %v105_v22 = vrot.slane %v103_v19, 1  ;;  %v136_v32 = vrot.slane %v96_v16, 1  ;;  %191 = vmatpush.bf16.msra.mxu0 %v2080_v37  ;;  %v327_v63 = vpack.c.b16 %v322_v60, %v322_v60  ;;  %vm559_vm12 = vcmask 1041409  }
  0x18   :  { %v117_v24 = vrot.slane %v115_v21, 1  ;;  %v135_v34 = vsel %vm132_vm4, %v133_v30, %v134_v31  ;;  %vm561_vm13 = vcmask 1042434   ;;  %vm563_vm14 = vcmask 1043459  }
  0x19   :  { %v106_v26 = vor.u32 %v105_v22, %v101_v18  ;;  %v138_v35 = vsel %vm132_vm4, %v136_v32, %v137_v33  ;;  %v339_v2 = vsel %vm337_vm8, %v327_v63, 0  ;;  %vm565_vm15 = vcmask 1044484  }
  0x1a   :  { %v118_v27 = vor.u32 %v117_v24, %v113_v20  ;;  %344 = vmatpush.bf16.msra.mxu1 %v339_v2  ;;  %vm567_vm0 = vcmask 1045509   ;;  %vm569_vm1 = vcmask 1046534  }
  0x1b   :  { %v111_v28 = vsel %vm99_vm3, %v106_v26, %v110_v23 }
  0x1c   :  { %124 = vrot.lane.b32.xlu0 %v111_v28, %s2318_s0  ;;  %v123_v29 = vsel %vm99_vm3, %v118_v27, %v122_v25 }
  0x1d   :  { %126 = vrot.lane.b32.xlu1 %v123_v29, %s2318_s0 }
  0x1e   :  { %345 = vmatpush.bf16.msra.mxu1 %v2086_v6 }
  0x24   :  { %139 = vrot.lane.b32.xlu0 %v135_v34, %s2319_s2 }
  0x25   :  { %141 = vrot.lane.b32.xlu1 %v138_v35, %s2319_s2 }
  0x8e   :  { %v125_v38 = vpop.permute.xlu0 %124 }
  0x8f   :  { %v145_v39 = vsel %vm2741_vm5, %v95_v15, %v125_v38  ;;  %v127_v42 = vpop.permute.xlu1 %126  ;;  %v2085_v15 = vld [vmem:[#allocation4 + $0x28] sm:$0xff] }
  0x90   :  { %v147_v43 = vsel %vm2741_vm5, %v96_v16, %v127_v42  ;;  %346 = vmatpush.bf16.msra.mxu1 %v2085_v15 }
  0x96   :  { %v140_v40 = vpop.permute.xlu0 %139 }
  0x97   :  { %v150_v41 = vsel %vm148_vm6, %v145_v39, %v140_v40  ;;  %v142_v44 = vpop.permute.xlu1 %141 }
  0x98   :  { %1986 = vmatmul.msk.bf16.vlgmr.msra.gmra.mxu0 %vm179_vm7, %v150_v41  ;;  %v152_v45 = vsel %vm148_vm6, %v147_v43, %v142_v44  ;;  %v2084_v44 = vld [vmem:[#allocation4 + $0x20] sm:$0xff] }
  0x99   :  { %347 = vmatpush.bf16.msra.mxu1 %v2084_v44 }
  0x9d   :  { %348 = vmatpush.bf16.msra.mxu1 %v2083_v9 }
  0xa8   :  { %1987 = vmatmul.msk.bf16.gmra.mxu0 %vm179_vm7, %v152_v45 }
 0x115   :  { %v193_v47 = vpop.f32.mrf.mxu0 }
 0x116   :  { %v194_v48 = vadd.f32 %v2114_v46, %v193_v47 }
 0x118   :  { %v203_v49 = vmax.f32 %v194_v48, 0.0 }
 0x11a   :  { %v207_v52 = vpack.c.bf16 %v203_v49, %v203_v49  ;;  %v2397_v49 = vld [vmem:[#allocation4 + $0x58] sm:$0xff] }
 0x11b   :  { %637 = vmatpush.bf16.msra.mxu3 %v2397_v49  ;;  %1202 = vmatpush.bf16.msrb.mxu0 %v2397_v49 }
 0x11c   :  { %v215_v55 = vunpack.c.l.b16 %v207_v52  ;;  %1317 = vmatpush.bf16.msrb.mxu1 %v2397_v49 }
 0x11d   :  { %v195_v50 = vpop.f32.mrf.mxu0 }
 0x11e   :  { %v196_v51 = vadd.f32 %v2114_v46, %v195_v50  ;;  %v2322_v50 = vmov 0  }
 0x11f   :  { %2112 = vset.pattern.permute.xlu1 %v2322_v50  ;;  %2113 = vset.pattern.permute.xlu2 %v2322_v50 }
 0x120   :  { %v204_v53 = vmax.f32 %v196_v51, 0.0  ;;  %v2400_v51 = vld [vmem:[#allocation4 + $0x50] sm:$0xff]  ;;  %2111 = vset.pattern.permute.xlu0 %v2322_v50 }
 0x121   :  { %638 = vmatpush.bf16.msra.mxu3 %v2400_v51  ;;  %1203 = vmatpush.bf16.msrb.mxu0 %v2400_v51 }
 0x122   :  { %v208_v54 = vpack.c.bf16 %v204_v53, %v204_v53  ;;  %1318 = vmatpush.bf16.msrb.mxu1 %v2400_v51 }
 0x124   :  { %v216_v56 = vunpack.c.l.b16 %v208_v54  ;;  %639 = vmatmul.bf16.vlgmr.msra.gmra.mxu3 %v2322_v50 }
 0x125   :  { %v198_v57 = vpop.f32.mrf.mxu0  ;;  %857 = vmatpush.bf16.msrb.mxu3 %v2397_v49 }
 0x126   :  { %v219_v58 = vpack.c.b16 %v216_v56, %v215_v55  ;;  %v199_v62 = vadd.f32 %v2114_v46, %v198_v57  ;;  %v2414_v56 = vld [vmem:[#allocation6 + $0x1] ss:$0 sm:$0xff] }
 0x128   :  { %v222_v61 = vshrl.u32 %v219_v58, 16  ;;  %v225_v1 = vshll.u32 %v219_v58, 16  ;;  %v205_v4 = vmax.f32 %v199_v62, 0.0 }
 0x129   :  { %858 = vmatpush.bf16.msrb.mxu3 %v2400_v51 }
 0x12a   :  { %v224_v0 = vrot.slane %v222_v61, 7  ;;  %v209_v13 = vpack.c.bf16 %v205_v4, %v205_v4 }
 0x12c   :  { %v227_v3 = vor.u32 %v225_v1, %v224_v0  ;;  %v241_v5 = vsel %vm2359_vm2, %v224_v0, 0  ;;  %v217_v21 = vunpack.c.l.b16 %v209_v13 }
 0x12d   :  { %v200_v7 = vpop.f32.mrf.mxu0  ;;  %v251_v12 = vshll.u32 %v241_v5, 16  ;;  %v276_v29 = vrot.slane %v241_v5, 1  ;;  %1087 = vmatpush.bf16.msra.mxu3 %v2397_v49 }
 0x12e   :  { %v239_v8 = vsel %vm2359_vm2, 0, %v227_v3  ;;  %v201_v10 = vadd.f32 %v2114_v46, %v200_v7 }
 0x12f   :  { %v246_v11 = vshll.u32 %v239_v8, 16  ;;  %v244_v16 = vshrl.u32 %v239_v8, 16  ;;  %v253_v20 = vrot.slane %v251_v12, 1  ;;  %v275_v26 = vrot.slane %v239_v8, 1 }
 0x130   :  { %v206_v14 = vmax.f32 %v201_v10, 0.0 }
 0x131   :  { %v248_v17 = vrot.slane %v246_v11, 1  ;;  %v277_v32 = vsel %vm132_vm4, %v275_v26, %v276_v29  ;;  %1088 = vmatpush.bf16.msra.mxu3 %v2400_v51 }
 0x132   :  { %v210_v18 = vpack.c.bf16 %v206_v14, %v206_v14 }
 0x133   :  { %v249_v19 = vor.u32 %v248_v17, %v244_v16 }
 0x134   :  { %v218_v22 = vunpack.c.l.b16 %v210_v18 }
 0x135   :  { %v254_v23 = vsel %vm99_vm3, %v249_v19, %v253_v20 }
 0x136   :  { %v220_v24 = vpack.c.b16 %v218_v22, %v217_v21  ;;  %267 = vrot.lane.b32.xlu2 %v254_v23, %s2320_s28 }
 0x138   :  { %v229_v25 = vshrl.u32 %v220_v24, 16  ;;  %v232_v28 = vshll.u32 %v220_v24, 16 }
 0x13a   :  { %v231_v27 = vrot.slane %v229_v25, 7 }
 0x13c   :  { %v234_v30 = vor.u32 %v232_v28, %v231_v27  ;;  %v242_v31 = vsel %vm2359_vm2, %v231_v27, 0 }
 0x13d   :  { %v279_v35 = vrot.slane %v242_v31, 1  ;;  %v263_v37 = vshll.u32 %v242_v31, 16 }
 0x13e   :  { %v240_v33 = vsel %vm2359_vm2, 0, %v234_v30  ;;  %281 = vrot.lane.b32.xlu2 %v277_v32, %s2321_s29  ;;  %vm571_vm2 = vcmask 1047559  }
 0x13f   :  { %v278_v34 = vrot.slane %v240_v33, 1  ;;  %v258_v36 = vshll.u32 %v240_v33, 16  ;;  %v256_v39 = vshrl.u32 %v240_v33, 16  ;;  %v265_v42 = vrot.slane %v263_v37, 1 }
 0x141   :  { %v280_v38 = vsel %vm132_vm4, %v278_v34, %v279_v35  ;;  %v260_v40 = vrot.slane %v258_v36, 1 }
 0x142   :  { %283 = vrot.lane.b32.xlu1 %v280_v38, %s2321_s29 }
 0x143   :  { %v261_v41 = vor.u32 %v260_v40, %v256_v39 }
 0x145   :  { %v266_v43 = vsel %vm99_vm3, %v261_v41, %v265_v42 }
 0x146   :  { %269 = vrot.lane.b32.xlu0 %v266_v43, %s2320_s28 }
 0x190   :  { %v268_v45 = vpop.permute.xlu2 %267 }
 0x191   :  { %v287_v46 = vsel %vm285_vm9, %v239_v8, %v268_v45 }
 0x198   :  { %v282_v47 = vpop.permute.xlu2 %281 }
 0x199   :  { %v291_v48 = vsel %vm179_vm7, %v287_v46, %v282_v47 }
 0x19a   :  { %2004 = vmatmul.msk.bf16.vlgmr.msra.gmra.mxu1 %vm332_vm10, %v291_v48 }
 0x1b4   :  { %v284_v53 = vpop.permute.xlu1 %283 }
 0x1b8   :  { %v270_v52 = vpop.permute.xlu0 %269 }
 0x1b9   :  { %v289_v54 = vsel %vm285_vm9, %v240_v33, %v270_v52  ;;  %v2088_v52 = vld [vmem:[#allocation4 + $0x48] sm:$0xff] }
 0x1ba   :  { %v293_v55 = vsel %vm179_vm7, %v289_v54, %v284_v53  ;;  %602 = vmatpush.bf16.msra.mxu2 %v2088_v52 }
 0x1bb   :  { %2005 = vmatmul.msk.bf16.gmra.mxu1 %vm332_vm10, %v293_v55 }
 0x217   :  { %v350_v57 = vpop.f32.mrf.mxu1 }
 0x218   :  { %v351_v58 = vadd.f32 %v2414_v56, %v350_v57 }
 0x21a   :  { %v360_v59 = vmax.f32 %v351_v58, 0.0 }
 0x21c   :  { %v368_v60 = vrot.slane %v360_v59, 2  ;;  %v369_v61 = vrot.slane %v360_v59, 4  ;;  %v370_v62 = vrot.slane %v360_v59, 6  ;;  %v393_v63 = vsel %vm392_vm11, %v360_v59, -inf  ;;  %v2087_v59 = vld [vmem:[#allocation4 + $0x40] sm:$0xff] }
 0x21d   :  { %v394_v0 = vrot.slane %v393_v63, 4  ;;  %603 = vmatpush.bf16.msra.mxu2 %v2087_v59 }
 0x21e   :  { %v400_v1 = vsel %vm392_vm11, %v368_v60, -inf  ;;  %v407_v2 = vsel %vm392_vm11, %v369_v61, -inf  ;;  %v414_v5 = vsel %vm392_vm11, %v370_v62, -inf }
 0x21f   :  { %v401_v3 = vrot.slane %v400_v1, 4  ;;  %v408_v4 = vrot.slane %v407_v2, 4  ;;  %v352_v6 = vpop.f32.mrf.mxu1  ;;  %v395_v8 = vmax.f32 %v393_v63, %v394_v0  ;;  %v415_v12 = vrot.slane %v414_v5, 4 }
 0x220   :  { %v353_v7 = vadd.f32 %v2414_v56, %v352_v6 }
 0x221   :  { %v402_v10 = vmax.f32 %v400_v1, %v401_v3  ;;  %v409_v11 = vmax.f32 %v407_v2, %v408_v4  ;;  %v396_v16 = vrot.slane %v395_v8, 2  ;;  %v416_v20 = vmax.f32 %v414_v5, %v415_v12  ;;  %744 = vmatpush.bf16.msrb.mxu2 %v2397_v49 }
 0x222   :  { %v361_v13 = vmax.f32 %v353_v7, 0.0 }
 0x223   :  { %v403_v14 = vrot.slane %v402_v10, 2  ;;  %v410_v19 = vrot.slane %v409_v11, 2  ;;  %v397_v24 = vmax.f32 %v395_v8, %v396_v16  ;;  %v417_v28 = vrot.slane %v416_v20, 2 }
 0x224   :  { %v421_v15 = vsel %vm392_vm11, %v361_v13, -inf  ;;  %v371_v17 = vrot.slane %v361_v13, 2  ;;  %v372_v18 = vrot.slane %v361_v13, 4  ;;  %v373_v22 = vrot.slane %v361_v13, 6 }
 0x225   :  { %v404_v21 = vmax.f32 %v402_v10, %v403_v14  ;;  %v422_v23 = vrot.slane %v421_v15, 4  ;;  %v411_v27 = vmax.f32 %v409_v11, %v410_v19  ;;  %v398_v34 = vrot.slane %v397_v24, 1  ;;  %v640_v19 = vpop.f32.mrf.mxu3  ;;  %745 = vmatpush.bf16.msrb.mxu2 %v2400_v51 }
 0x226   :  { %v428_v25 = vsel %vm392_vm11, %v371_v17, -inf  ;;  %v435_v26 = vsel %vm392_vm11, %v372_v18, -inf  ;;  %v442_v31 = vsel %vm392_vm11, %v373_v22, -inf  ;;  %v418_v36 = vmax.f32 %v416_v20, %v417_v28  ;;  %v2433_v18 = vld [vmem:[#allocation6 + $0x3] ss:$0 sm:$0xff] }
 0x227   :  { %v405_v29 = vrot.slane %v404_v21, 1  ;;  %v423_v30 = vmax.f32 %v421_v15, %v422_v23  ;;  %v429_v32 = vrot.slane %v428_v25, 4  ;;  %v436_v33 = vrot.slane %v435_v26, 4 }
 0x228   :  { %v412_v35 = vrot.slane %v411_v27, 1  ;;  %v443_v37 = vrot.slane %v442_v31, 4  ;;  %v399_v42 = vmax.f32 %v397_v24, %v398_v34  ;;  %v419_v44 = vrot.slane %v418_v36, 1 }
 0x229   :  { %v406_v38 = vmax.f32 %v404_v21, %v405_v29  ;;  %v424_v39 = vrot.slane %v423_v30, 2  ;;  %v430_v40 = vmax.f32 %v428_v25, %v429_v32  ;;  %v437_v41 = vmax.f32 %v435_v26, %v436_v33 }
 0x22a   :  { %v413_v43 = vmax.f32 %v411_v27, %v412_v35  ;;  %v444_v9 = vmax.f32 %v442_v31, %v443_v37  ;;  %v505_v50 = vpack.c.bf16 %v399_v42, %v399_v42  ;;  %v420_v53 = vmax.f32 %v418_v36, %v419_v44 }
 0x22b   :  { %v506_v45 = vpack.c.bf16 %v406_v38, %v406_v38  ;;  %v425_v46 = vmax.f32 %v423_v30, %v424_v39  ;;  %v431_v47 = vrot.slane %v430_v40, 2  ;;  %v438_v48 = vrot.slane %v437_v41, 2 }
 0x22c   :  { %v507_v54 = vpack.c.bf16 %v413_v43, %v413_v43  ;;  %v445_v55 = vrot.slane %v444_v9, 2  ;;  %v543_v63 = vunpack.c.l.b16 %v505_v50  ;;  %v508_v1 = vpack.c.bf16 %v420_v53, %v420_v53 }
 0x22d   :  { %v544_v57 = vunpack.c.l.b16 %v506_v45  ;;  %v426_v58 = vrot.slane %v425_v46, 1  ;;  %v432_v60 = vmax.f32 %v430_v40, %v431_v47  ;;  %v439_v61 = vmax.f32 %v437_v41, %v438_v48  ;;  %v642_v53 = vpop.f32.mrf.mxu3 }
 0x22e   :  { %v545_v2 = vunpack.c.l.b16 %v507_v54  ;;  %v446_v3 = vmax.f32 %v444_v9, %v445_v55  ;;  %v546_v14 = vunpack.c.l.b16 %v508_v1  ;;  %v2447_v32 = vadd.f32 %v2433_v18, %v640_v19 }
 0x22f   :  { %v2427_v4 = vmax.f32 %v425_v46, %v426_v58  ;;  %v560_v6 = vsel %vm559_vm12, %v544_v57, %v543_v63  ;;  %v433_v7 = vrot.slane %v432_v60, 1  ;;  %v440_v8 = vrot.slane %v439_v61, 1 }
 0x230   :  { %v447_v16 = vrot.slane %v446_v3, 1  ;;  %v562_v17 = vsel %vm561_vm13, %v545_v2, %v560_v6  ;;  %688 = vrot.lane.b32.xlu0 %v2447_v32, %s2314_s20 }
 0x231   :  { %v509_v20 = vpack.c.bf16 %v2427_v4, %v2427_v4  ;;  %v2442_v30 = vmax.f32 %v432_v60, %v433_v7  ;;  %v2444_v31 = vmax.f32 %v439_v61, %v440_v8  ;;  %v564_v39 = vsel %vm563_vm14, %v546_v14, %v562_v17 }
 0x232   :  { %v2449_v38 = vmax.f32 %v446_v3, %v447_v16 }
 0x233   :  { %v547_v3 = vunpack.c.l.b16 %v509_v20 }
 0x238   :  { %v355_v62 = vpop.f32.mrf.mxu1 }
 0x239   :  { %v356_v0 = vadd.f32 %v2414_v56, %v355_v62 }
 0x23b   :  { %v362_v5 = vmax.f32 %v356_v0, 0.0 }
 0x23d   :  { %v374_v10 = vrot.slane %v362_v5, 2  ;;  %v375_v11 = vrot.slane %v362_v5, 4  ;;  %v376_v12 = vrot.slane %v362_v5, 6  ;;  %v449_v13 = vsel %vm392_vm11, %v362_v5, -inf }
 0x23e   :  { %v450_v15 = vrot.slane %v449_v13, 4 }
 0x23f   :  { %v456_v21 = vsel %vm392_vm11, %v374_v10, -inf  ;;  %v463_v22 = vsel %vm392_vm11, %v375_v11, -inf  ;;  %v470_v23 = vsel %vm392_vm11, %v376_v12, -inf }
 0x240   :  { %v451_v24 = vmax.f32 %v449_v13, %v450_v15  ;;  %v457_v25 = vrot.slane %v456_v21, 4  ;;  %v464_v26 = vrot.slane %v463_v22, 4  ;;  %v471_v27 = vrot.slane %v470_v23, 4  ;;  %v357_v28 = vpop.f32.mrf.mxu1 }
 0x241   :  { %v358_v29 = vadd.f32 %v2414_v56, %v357_v28  ;;  %v645_v56 = vrot.slane %v2447_v32, 1  ;;  %v510_v15 = vpack.c.bf16 %v2442_v30, %v2442_v30 }
 0x242   :  { %v452_v33 = vrot.slane %v451_v24, 2  ;;  %v458_v34 = vmax.f32 %v456_v21, %v457_v25  ;;  %v465_v35 = vmax.f32 %v463_v22, %v464_v26  ;;  %v472_v36 = vmax.f32 %v470_v23, %v471_v27 }
 0x243   :  { %v363_v37 = vmax.f32 %v358_v29, 0.0  ;;  %690 = vrot.lane.b32.xlu2 %v645_v56, %s2314_s20 }
 0x244   :  { %v453_v40 = vmax.f32 %v451_v24, %v452_v33  ;;  %v459_v41 = vrot.slane %v458_v34, 2  ;;  %v466_v42 = vrot.slane %v465_v35, 2  ;;  %v473_v43 = vrot.slane %v472_v36, 2 }
 0x245   :  { %v377_v44 = vrot.slane %v363_v37, 2  ;;  %v378_v9 = vrot.slane %v363_v37, 4  ;;  %v379_v45 = vrot.slane %v363_v37, 6  ;;  %v477_v46 = vsel %vm392_vm11, %v363_v37, -inf }
 0x246   :  { %v454_v47 = vrot.slane %v453_v40, 1  ;;  %v460_v48 = vmax.f32 %v458_v34, %v459_v41  ;;  %v467_v50 = vmax.f32 %v465_v35, %v466_v42  ;;  %v474_v52 = vmax.f32 %v472_v36, %v473_v43 }
 0x247   :  { %v478_v54 = vrot.slane %v477_v46, 4  ;;  %v484_v55 = vsel %vm392_vm11, %v377_v44, -inf  ;;  %v491_v57 = vsel %vm392_vm11, %v378_v9, -inf  ;;  %v498_v58 = vsel %vm392_vm11, %v379_v45, -inf }
 0x248   :  { %v455_v59 = vmax.f32 %v453_v40, %v454_v47  ;;  %v461_v60 = vrot.slane %v460_v48, 1  ;;  %v468_v61 = vrot.slane %v467_v50, 1  ;;  %v475_v62 = vrot.slane %v474_v52, 1 }
 0x249   :  { %v479_v63 = vmax.f32 %v477_v46, %v478_v54  ;;  %v485_v0 = vrot.slane %v484_v55, 4  ;;  %v492_v1 = vrot.slane %v491_v57, 4  ;;  %v499_v2 = vrot.slane %v498_v58, 4 }
 0x24a   :  { %v462_v4 = vmax.f32 %v460_v48, %v461_v60  ;;  %v469_v5 = vmax.f32 %v467_v50, %v468_v61  ;;  %v513_v6 = vpack.c.bf16 %v455_v59, %v455_v59  ;;  %v476_v12 = vmax.f32 %v474_v52, %v475_v62 }
 0x24b   :  { %v480_v7 = vrot.slane %v479_v63, 2  ;;  %v486_v8 = vmax.f32 %v484_v55, %v485_v0  ;;  %v493_v10 = vmax.f32 %v491_v57, %v492_v1  ;;  %v500_v11 = vmax.f32 %v498_v58, %v499_v2  ;;  %v2117_v1 = vld [vmem:[#allocation6 + $0x2] ss:$0 sm:$0xff] }
 0x24c   :  { %v514_v13 = vpack.c.bf16 %v462_v4, %v462_v4  ;;  %v515_v14 = vpack.c.bf16 %v469_v5, %v469_v5  ;;  %v551_v22 = vunpack.c.l.b16 %v513_v6  ;;  %v511_v24 = vpack.c.bf16 %v2444_v31, %v2444_v31 }
 0x24d   :  { %v481_v16 = vmax.f32 %v479_v63, %v480_v7  ;;  %v487_v17 = vrot.slane %v486_v8, 2  ;;  %v494_v19 = vrot.slane %v493_v10, 2  ;;  %v501_v21 = vrot.slane %v500_v11, 2 }
 0x24e   :  { %v552_v23 = vunpack.c.l.b16 %v514_v13  ;;  %v553_v20 = vunpack.c.l.b16 %v515_v14  ;;  %v516_v29 = vpack.c.bf16 %v476_v12, %v476_v12  ;;  %v548_v33 = vunpack.c.l.b16 %v510_v15 }
 0x24f   :  { %v482_v25 = vrot.slane %v481_v16, 1  ;;  %v488_v26 = vmax.f32 %v486_v8, %v487_v17  ;;  %v495_v27 = vmax.f32 %v493_v10, %v494_v19  ;;  %v502_v28 = vmax.f32 %v500_v11, %v501_v21 }
 0x250   :  { %v566_v34 = vsel %vm565_vm15, %v547_v3, %v564_v39  ;;  %v573_v30 = vsel %vm559_vm12, %v552_v23, %v551_v22  ;;  %v554_v9 = vunpack.c.l.b16 %v516_v29  ;;  %v512_v45 = vpack.c.bf16 %v2449_v38, %v2449_v38 }
 0x251   :  { %v483_v35 = vmax.f32 %v481_v16, %v482_v25  ;;  %v489_v36 = vrot.slane %v488_v26, 1  ;;  %v496_v37 = vrot.slane %v495_v27, 1  ;;  %v503_v40 = vrot.slane %v502_v28, 1 }
 0x252   :  { %v574_v41 = vsel %vm561_vm13, %v553_v20, %v573_v30  ;;  %v549_v46 = vunpack.c.l.b16 %v511_v24  ;;  %v568_v39 = vsel %vm567_vm0, %v548_v33, %v566_v34  ;;  %v550_v59 = vunpack.c.l.b16 %v512_v45 }
 0x253   :  { %v517_v42 = vpack.c.bf16 %v483_v35, %v483_v35  ;;  %v490_v43 = vmax.f32 %v488_v26, %v489_v36  ;;  %v497_v31 = vmax.f32 %v495_v27, %v496_v37  ;;  %v504_v44 = vmax.f32 %v502_v28, %v503_v40 }
 0x254   :  { %v575_v53 = vsel %vm563_vm14, %v554_v9, %v574_v41  ;;  %v570_v58 = vsel %vm569_vm1, %v549_v46, %v568_v39 }
 0x255   :  { %v555_v47 = vunpack.c.l.b16 %v517_v42  ;;  %v518_v48 = vpack.c.bf16 %v490_v43, %v490_v43  ;;  %v519_v50 = vpack.c.bf16 %v497_v31, %v497_v31  ;;  %v520_v52 = vpack.c.bf16 %v504_v44, %v504_v44 }
 0x256   :  { %v572_v62 = vsel %vm571_vm2, %v550_v59, %v570_v58 }
 0x257   :  { %v556_v54 = vunpack.c.l.b16 %v518_v48  ;;  %v557_v55 = vunpack.c.l.b16 %v519_v50  ;;  %v576_v57 = vsel %vm565_vm15, %v555_v47, %v575_v53  ;;  %v558_v60 = vunpack.c.l.b16 %v520_v52 }
 0x259   :  { %v577_v38 = vsel %vm567_vm0, %v556_v54, %v576_v57 }
 0x25a   :  { %v578_v61 = vsel %vm569_vm1, %v557_v55, %v577_v38 }
 0x25b   :  { %v579_v63 = vsel %vm571_vm2, %v558_v60, %v578_v61 }
 0x25c   :  { %v580_v0 = vpack.c.b16 %v579_v63, %v572_v62 }
 0x25e   :  { %2014 = vmatmul.msk.bf16.vlgmr.msra.gmra.mxu2 %vm148_vm6, %v580_v0 }
 0x25f   :  { %972 = vmatpush.bf16.msra.mxu2 %v2397_v49 }
 0x263   :  { %973 = vmatpush.bf16.msra.mxu2 %v2400_v51 }
 0x29d   :  { %v691_v36 = vpop.permute.xlu2 %690 }
 0x2e1   :  { %v605_v2 = vpop.f32.mrf.mxu2 }
 0x2e2   :  { %v2482_v3 = vadd.f32 %v2117_v1, %v605_v2 }
 0x2e4   :  { %v648_v4 = vadd.f32 %v2447_v32, %v2482_v3  ;;  %v689_v32 = vpop.permute.xlu0 %688 }
 0x2e6   :  { %v2023_v5 = vmul.f32 -1.442695, %v648_v4 }
 0x2e8   :  { %2122 = vpow2.f32 %v2023_v5 }
 0x2e9   :  { %v607_v6 = vpop.f32.mrf.mxu2 }
 0x2ea   :  { %v2486_v7 = vadd.f32 %v2117_v1, %v607_v6 }
 0x2ec   :  { %v649_v8 = vadd.f32 %v645_v56, %v2486_v7 }
 0x2ee   :  { %v2123_v10 = vpop.eup %2122  ;;  %v2024_v11 = vmul.f32 -1.442695, %v649_v8 }
 0x2ef   :  { %v656_v12 = vadd.f32 1.0, %v2123_v10 }
 0x2f0   :  { %2124 = vpow2.f32 %v2024_v11 }
 0x2f1   :  { %2126 = vrcp.f32 %v656_v12  ;;  %v669_v19 = vand.u32 2147483648, %v656_v12  ;;  %v667_v22 = vand.u32 2147483647, %v656_v12  ;;  %vm663_vm4 = vweird.f32 %v656_v12 }
 0x2f3   :  { %v670_v56 = vor.u32 1.1754944e-38, %v669_v19  ;;  %vm668_vm9 = vcmp.eq.f32.partialorder %v667_v22, 8.507059e+37 }
 0x2f6   :  { %v2125_v13 = vpop.eup %2124 }
 0x2f7   :  { %v2127_v14 = vpop.eup %2126  ;;  %v657_v15 = vadd.f32 1.0, %v2125_v13 }
 0x2f8   :  { %v659_v16 = vmul.f32 %v2127_v14, %v656_v12  ;;  %vm664_vm3 = vweird.f32 %v2127_v14 }
 0x2f9   :  { %2128 = vrcp.f32 %v657_v15  ;;  %vm665_vm7 = vmor %vm663_vm4, %vm664_vm3  ;;  %v684_v29 = vand.u32 2147483648, %v657_v15  ;;  %v682_v34 = vand.u32 2147483647, %v657_v15  ;;  %vm678_vm11 = vweird.f32 %v657_v15 }
 0x2fa   :  { %v660_v17 = vsub.f32 1.0, %v659_v16 }
 0x2fb   :  { %v685_v35 = vor.u32 1.1754944e-38, %v684_v29  ;;  %vm683_vm15 = vcmp.eq.f32.partialorder %v682_v34, 8.507059e+37 }
 0x2fc   :  { %v661_v21 = vmul.f32 %v2127_v14, %v660_v17 }
 0x2fe   :  { %v662_v23 = vadd.f32 %v2127_v14, %v661_v21 }
 0x2ff   :  { %v2129_v20 = vpop.eup %2128 }
 0x300   :  { %v666_v24 = vsel %vm665_vm7, %v2127_v14, %v662_v23  ;;  %v674_v25 = vmul.f32 %v2129_v20, %v657_v15  ;;  %vm679_vm10 = vweird.f32 %v2129_v20 }
 0x301   :  { %v671_v26 = vsel %vm668_vm9, %v670_v56, %v666_v24  ;;  %vm680_vm13 = vmor %vm678_vm11, %vm679_vm10 }
 0x302   :  { %v694_v27 = vmul.f32 %v689_v32, %v671_v26  ;;  %v675_v28 = vsub.f32 1.0, %v674_v25  ;;  %v708_v39 = vsub.f32 1.0, %v671_v26  ;;  %v720_v48 = vmul.f32 0.0, %v671_v26 }
 0x304   :  { %698 = vrot.lane.b32.xlu2 %v694_v27, %s2314_s20  ;;  %v676_v33 = vmul.f32 %v2129_v20, %v675_v28 }
 0x306   :  { %v677_v30 = vadd.f32 %v2129_v20, %v676_v33 }
 0x308   :  { %v681_v37 = vsel %vm680_vm13, %v2129_v20, %v677_v30 }
 0x309   :  { %v686_v40 = vsel %vm683_vm15, %v685_v35, %v681_v37  ;;  %vm1556_vm15 = vcmask 1041408  }
 0x30a   :  { %v695_v41 = vmul.f32 %v691_v36, %v686_v40  ;;  %v709_v50 = vsub.f32 1.0, %v686_v40  ;;  %v721_v54 = vmul.f32 0.0, %v686_v40 }
 0x30c   :  { %700 = vrot.lane.b32.xlu1 %v695_v41, %s2314_s20 }
 0x35e   :  { %v699_v42 = vpop.permute.xlu2 %698 }
 0x35f   :  { %v704_v43 = vadd.f32 %v699_v42, %v2482_v3 }
 0x361   :  { %2130 = vtanh.f32 %v704_v43 }
 0x367   :  { %v2131_v31 = vpop.eup %2130 }
 0x368   :  { %712 = vrot.lane.b32.xlu1 %v2131_v31, %s2323_s30 }
 0x37e   :  { %v701_v44 = vpop.permute.xlu1 %700 }
 0x37f   :  { %v705_v9 = vadd.f32 %v701_v44, %v2486_v7 }
 0x381   :  { %2132 = vtanh.f32 %v705_v9 }
 0x387   :  { %v2133_v45 = vpop.eup %2132 }
 0x388   :  { %714 = vrot.lane.b32.xlu0 %v2133_v45, %s2323_s30 }
 0x3da   :  { %v713_v46 = vpop.permute.xlu1 %712 }
 0x3db   :  { %v718_v47 = vmul.f32 %v713_v46, %v708_v39 }
 0x3dd   :  { %v2497_v53 = vadd.f32 %v720_v48, %v718_v47 }
 0x3df   :  { %v724_v58 = vpack.c.bf16 %v2497_v53, %v2497_v53 }
 0x3e1   :  { %v728_v38 = vunpack.c.l.b16 %v724_v58 }
 0x3fa   :  { %v715_v52 = vpop.permute.xlu0 %714 }
 0x3fb   :  { %v719_v55 = vmul.f32 %v715_v52, %v709_v50  ;;  %v829_v52 = vrot.slane %v2497_v53, 7 }
 0x3fd   :  { %v2499_v57 = vadd.f32 %v721_v54, %v719_v55 }
 0x3ff   :  { %v725_v59 = vpack.c.bf16 %v2499_v57, %v2499_v57  ;;  %v830_v45 = vrot.slane %v2499_v57, 7 }
 0x401   :  { %v729_v60 = vunpack.c.l.b16 %v725_v59 }
 0x403   :  { %v730_v61 = vrot.slane %v729_v60, 7 }
 0x405   :  { %v731_v62 = vsel %vm559_vm12, %v730_v61, %v728_v38 }
 0x406   :  { %v732_v63 = vpack.c.b16 %v731_v62, %v731_v62 }
 0x408   :  { %733 = vrot.lane.b32.xlu2 %v732_v63, %s2323_s30  ;;  %v1526_v63 = vsel %vm559_vm12, %v830_v45, %v2497_v53 }
 0x462   :  { %v734_v0 = vpop.permute.xlu2 %733 }
 0x463   :  { %2025 = vmatmul.msk.bf16.vlgmr.msrb.gmra.mxu2 %vm148_vm6, %v734_v0 }
 0x464   :  { %1432 = vmatpush.bf16.msrb.mxu2 %v2397_v49 }
 0x468   :  { %1433 = vmatpush.bf16.msrb.mxu2 %v2400_v51 }
 0x4e6   :  { %v747_v1 = vpop.f32.mrf.mxu2 }
 0x4e7   :  { %v748_v2 = vadd.f32 %v2433_v18, %v747_v1 }
 0x4e9   :  { %797 = vrot.lane.b32.xlu1 %v748_v2, %s2314_s20  ;;  %v752_v4 = vrot.slane %v748_v2, 7  ;;  %v756_v6 = vadd.f32 %v748_v2, %v2486_v7 }
 0x4eb   :  { %795 = vrot.lane.b32.xlu0 %v752_v4, %s2314_s20  ;;  %v755_v8 = vadd.f32 %v752_v4, %v2482_v3  ;;  %v2027_v10 = vmul.f32 -1.442695, %v756_v6 }
 0x4ed   :  { %v2026_v11 = vmul.f32 -1.442695, %v755_v8  ;;  %2134 = vpow2.f32 %v2027_v10 }
 0x4ee   :  { %v749_v5 = vpop.f32.mrf.mxu2 }
 0x4ef   :  { %2136 = vpow2.f32 %v2026_v11 }
 0x4f3   :  { %v2135_v49 = vpop.eup %2134 }
 0x4f4   :  { %v764_v51 = vadd.f32 1.0, %v2135_v49 }
 0x4f5   :  { %v2137_v12 = vpop.eup %2136 }
 0x4f6   :  { %v763_v13 = vadd.f32 1.0, %v2137_v12  ;;  %2138 = vrcp.f32 %v764_v51  ;;  %v791_v32 = vand.u32 2147483648, %v764_v51  ;;  %vm785_vm3 = vweird.f32 %v764_v51 }
 0x4f7   :  { %v789_v56 = vand.u32 2147483647, %v764_v51 }
 0x4f8   :  { %2140 = vrcp.f32 %v763_v13  ;;  %v776_v25 = vand.u32 2147483648, %v763_v13  ;;  %vm770_vm9 = vweird.f32 %v763_v13  ;;  %v774_v27 = vand.u32 2147483647, %v763_v13 }
 0x4f9   :  { %v792_v28 = vor.u32 1.1754944e-38, %v791_v32  ;;  %vm790_vm11 = vcmp.eq.f32.partialorder %v789_v56, 8.507059e+37 }
 0x4fa   :  { %v777_v30 = vor.u32 1.1754944e-38, %v776_v25  ;;  %vm775_vm13 = vcmp.eq.f32.partialorder %v774_v27, 8.507059e+37 }
 0x4fc   :  { %v2139_v14 = vpop.eup %2138 }
 0x4fd   :  { %v781_v16 = vmul.f32 %v2139_v14, %v764_v51  ;;  %vm786_vm1 = vweird.f32 %v2139_v14 }
 0x4fe   :  { %v2141_v15 = vpop.eup %2140  ;;  %vm787_vm7 = vmor %vm785_vm3, %vm786_vm1 }
 0x4ff   :  { %v766_v17 = vmul.f32 %v2141_v15, %v763_v13  ;;  %v782_v19 = vsub.f32 1.0, %v781_v16  ;;  %vm771_vm4 = vweird.f32 %v2141_v15 }
 0x500   :  { %vm772_vm10 = vmor %vm770_vm9, %vm771_vm4 }
 0x501   :  { %v767_v21 = vsub.f32 1.0, %v766_v17  ;;  %v783_v22 = vmul.f32 %v2139_v14, %v782_v19 }
 0x503   :  { %v768_v23 = vmul.f32 %v2141_v15, %v767_v21  ;;  %v784_v20 = vadd.f32 %v2139_v14, %v783_v22 }
 0x505   :  { %v769_v24 = vadd.f32 %v2141_v15, %v768_v23  ;;  %v788_v26 = vsel %vm787_vm7, %v2139_v14, %v784_v20 }
 0x506   :  { %v793_v34 = vsel %vm790_vm11, %v792_v28, %v788_v26 }
 0x507   :  { %v773_v29 = vsel %vm772_vm10, %v2141_v15, %v769_v24  ;;  %v816_v46 = vsub.f32 1.0, %v793_v34  ;;  %v834_v47 = vmul.f32 %v830_v45, %v793_v34 }
 0x508   :  { %v778_v37 = vsel %vm775_vm13, %v777_v30, %v773_v29 }
 0x509   :  { %v815_v50 = vsub.f32 1.0, %v778_v37  ;;  %v833_v58 = vmul.f32 %v829_v52, %v778_v37 }
 0x55b   :  { %v798_v33 = vpop.permute.xlu1 %797 }
 0x55c   :  { %v802_v35 = vmul.f32 %v798_v33, %v793_v34 }
 0x55d   :  { %v796_v36 = vpop.permute.xlu0 %795 }
 0x55e   :  { %v801_v40 = vmul.f32 %v796_v36, %v778_v37  ;;  %807 = vrot.lane.b32.xlu0 %v802_v35, %s2314_s20 }
 0x560   :  { %805 = vrot.lane.b32.xlu2 %v801_v40, %s2314_s20 }
 0x5ba   :  { %v806_v41 = vpop.permute.xlu2 %805 }
 0x5bb   :  { %v811_v42 = vadd.f32 %v806_v41, %v2482_v3 }
 0x5bd   :  { %2142 = vtanh.f32 %v811_v42 }
 0x5c3   :  { %v2143_v43 = vpop.eup %2142 }
 0x5c4   :  { %819 = vrot.lane.b32.xlu1 %v2143_v43, %s2323_s30 }
 0x5d0   :  { %v808_v31 = vpop.permute.xlu0 %807 }
 0x5d1   :  { %v812_v44 = vadd.f32 %v808_v31, %v2486_v7 }
 0x5d3   :  { %2144 = vtanh.f32 %v812_v44 }
 0x5d9   :  { %v2145_v9 = vpop.eup %2144 }
 0x5da   :  { %821 = vrot.lane.b32.xlu2 %v2145_v9, %s2323_s30 }
 0x634   :  { %v822_v39 = vpop.permute.xlu2 %821 }
 0x635   :  { %v826_v48 = vmul.f32 %v822_v39, %v816_v46 }
 0x636   :  { %v820_v54 = vpop.permute.xlu1 %819 }
 0x637   :  { %v836_v55 = vadd.f32 %v834_v47, %v826_v48  ;;  %v825_v59 = vmul.f32 %v820_v54, %v815_v50 }
 0x639   :  { %v2523_v60 = vadd.f32 %v833_v58, %v825_v59  ;;  %v838_v38 = vpack.c.bf16 %v836_v55, %v836_v55  ;;  %v1528_v61 = vrot.slane %v836_v55, 6  ;;  %v944_v25 = vrot.slane %v836_v55, 7 }
 0x63b   :  { %v837_v62 = vpack.c.bf16 %v2523_v60, %v2523_v60  ;;  %v943_v57 = vrot.slane %v2523_v60, 7  ;;  %v842_v4 = vunpack.c.l.b16 %v838_v38 }
 0x63d   :  { %v841_v0 = vunpack.c.l.b16 %v837_v62  ;;  %v1529_v1 = vsel %vm563_vm14, %v1528_v61, %v943_v57 }
 0x63e   :  { %v2534_v2 = vsel %vm1556_vm15, %v1526_v63, %v1529_v1 }
 0x63f   :  { %v843_v5 = vrot.slane %v841_v0, 1 }
 0x641   :  { %v844_v6 = vsel %vm559_vm12, %v842_v4, %v843_v5 }
 0x642   :  { %v845_v8 = vpack.c.b16 %v844_v6, %v844_v6 }
 0x644   :  { %846 = vrot.lane.b32.xlu0 %v845_v8, %s2323_s30 }
 0x6b6   :  { %v847_v10 = vpop.permute.xlu0 %846 }
 0x6b7   :  { %2028 = vmatmul.msk.bf16.vlgmr.msrb.gmra.mxu3 %vm148_vm6, %v847_v10 }
 0x73a   :  { %v860_v11 = vpop.f32.mrf.mxu3 }
 0x73b   :  { %v861_v53 = vadd.f32 %v2433_v18, %v860_v11 }
 0x73d   :  { %v866_v49 = vrot.slane %v861_v53, 7  ;;  %v865_v12 = vrot.slane %v861_v53, 6 }
 0x73f   :  { %911 = vrot.lane.b32.xlu2 %v866_v49, %s2314_s20  ;;  %v870_v51 = vadd.f32 %v866_v49, %v2486_v7  ;;  %909 = vrot.lane.b32.xlu1 %v865_v12, %s2314_s20  ;;  %v869_v28 = vadd.f32 %v865_v12, %v2482_v3 }
 0x741   :  { %v2030_v13 = vmul.f32 -1.442695, %v870_v51  ;;  %v2029_v29 = vmul.f32 -1.442695, %v869_v28 }
 0x742   :  { %v862_v14 = vpop.f32.mrf.mxu3 }
 0x743   :  { %2146 = vpow2.f32 %v2030_v13 }
 0x749   :  { %v2147_v15 = vpop.eup %2146 }
 0x74a   :  { %v878_v16 = vadd.f32 1.0, %v2147_v15 }
 0x74c   :  { %2148 = vrcp.f32 %v878_v16  ;;  %v905_v22 = vand.u32 2147483648, %v878_v16  ;;  %v903_v20 = vand.u32 2147483647, %v878_v16  ;;  %vm899_vm3 = vweird.f32 %v878_v16 }
 0x74d   :  { %2150 = vpow2.f32 %v2029_v29 }
 0x74e   :  { %v906_v56 = vor.u32 1.1754944e-38, %v905_v22  ;;  %vm904_vm7 = vcmp.eq.f32.partialorder %v903_v20, 8.507059e+37 }
 0x752   :  { %v2149_v17 = vpop.eup %2148 }
 0x753   :  { %v895_v19 = vmul.f32 %v2149_v17, %v878_v16  ;;  %vm900_vm1 = vweird.f32 %v2149_v17  ;;  %v2151_v33 = vpop.eup %2150 }
 0x754   :  { %vm901_vm4 = vmor %vm899_vm3, %vm900_vm1  ;;  %v877_v34 = vadd.f32 1.0, %v2151_v33 }
 0x755   :  { %v896_v21 = vsub.f32 1.0, %v895_v19 }
 0x756   :  { %2152 = vrcp.f32 %v877_v34  ;;  %v890_v43 = vand.u32 2147483648, %v877_v34  ;;  %vm884_vm10 = vweird.f32 %v877_v34  ;;  %v888_v31 = vand.u32 2147483647, %v877_v34 }
 0x757   :  { %v897_v23 = vmul.f32 %v2149_v17, %v896_v21 }
 0x758   :  { %v891_v9 = vor.u32 1.1754944e-38, %v890_v43  ;;  %vm889_vm13 = vcmp.eq.f32.partialorder %v888_v31, 8.507059e+37 }
 0x759   :  { %v898_v32 = vadd.f32 %v2149_v17, %v897_v23 }
 0x75b   :  { %v902_v24 = vsel %vm901_vm4, %v2149_v17, %v898_v32 }
 0x75c   :  { %v907_v26 = vsel %vm904_vm7, %v906_v56, %v902_v24  ;;  %v2153_v36 = vpop.eup %2152 }
 0x75d   :  { %v948_v27 = vmul.f32 %v944_v25, %v907_v26  ;;  %v880_v37 = vmul.f32 %v2153_v36, %v877_v34  ;;  %vm885_vm9 = vweird.f32 %v2153_v36  ;;  %v930_v59 = vsub.f32 1.0, %v907_v26 }
 0x75e   :  { %vm886_vm11 = vmor %vm884_vm10, %vm885_vm9 }
 0x75f   :  { %v881_v40 = vsub.f32 1.0, %v880_v37 }
 0x761   :  { %v882_v41 = vmul.f32 %v2153_v36, %v881_v40 }
 0x763   :  { %v883_v42 = vadd.f32 %v2153_v36, %v882_v41 }
 0x765   :  { %v887_v44 = vsel %vm886_vm11, %v2153_v36, %v883_v42 }
 0x766   :  { %v892_v46 = vsel %vm889_vm13, %v891_v9, %v887_v44 }
 0x767   :  { %v929_v58 = vsub.f32 1.0, %v892_v46  ;;  %v947_v62 = vmul.f32 %v943_v57, %v892_v46 }
 0x799   :  { %v912_v30 = vpop.permute.xlu2 %911 }
 0x79a   :  { %v916_v35 = vmul.f32 %v912_v30, %v907_v26 }
 0x79c   :  { %921 = vrot.lane.b32.xlu1 %v916_v35, %s2314_s20 }
 0x7b1   :  { %v910_v45 = vpop.permute.xlu1 %909 }
 0x7b2   :  { %v915_v39 = vmul.f32 %v910_v45, %v892_v46 }
 0x7b4   :  { %919 = vrot.lane.b32.xlu0 %v915_v39, %s2314_s20 }
 0x80e   :  { %v922_v47 = vpop.permute.xlu1 %921 }
 0x80f   :  { %v926_v48 = vadd.f32 %v922_v47, %v2486_v7 }
 0x811   :  { %2154 = vtanh.f32 %v926_v48 }
 0x817   :  { %v2155_v50 = vpop.eup %2154 }
 0x818   :  { %935 = vrot.lane.b32.xlu0 %v2155_v50, %s2323_s30 }
 0x826   :  { %v920_v52 = vpop.permute.xlu0 %919 }
 0x827   :  { %v925_v54 = vadd.f32 %v920_v52, %v2482_v3 }
 0x829   :  { %2156 = vtanh.f32 %v925_v54 }
 0x82f   :  { %v2157_v55 = vpop.eup %2156 }
 0x830   :  { %933 = vrot.lane.b32.xlu2 %v2157_v55, %s2323_s30 }
 0x88a   :  { %v934_v38 = vpop.permute.xlu2 %933  ;;  %v936_v61 = vpop.permute.xlu0 %935 }
 0x88b   :  { %v939_v63 = vmul.f32 %v934_v38, %v929_v58  ;;  %v940_v0 = vmul.f32 %v936_v61, %v930_v59 }
 0x88d   :  { %v949_v1 = vadd.f32 %v947_v62, %v939_v63  ;;  %v2552_v4 = vadd.f32 %v948_v27, %v940_v0 }
 0x88f   :  { %v951_v5 = vpack.c.bf16 %v949_v1, %v949_v1  ;;  %v1531_v6 = vrot.slane %v949_v1, 6  ;;  %v952_v8 = vpack.c.bf16 %v2552_v4, %v2552_v4  ;;  %v1532_v10 = vrot.slane %v2552_v4, 5 }
 0x890   :  { %v1058_v34 = vrot.slane %v949_v1, 7  ;;  %v1059_v1 = vrot.slane %v2552_v4, 7 }
 0x891   :  { %v955_v11 = vunpack.c.l.b16 %v951_v5  ;;  %v956_v53 = vunpack.c.l.b16 %v952_v8  ;;  %v1533_v49 = vsel %vm567_vm0, %v1532_v10, %v1531_v6 }
 0x892   :  { %v2560_v60 = vsel %vm337_vm8, %v2534_v2, %v1533_v49 }
 0x893   :  { %v957_v57 = vrot.slane %v955_v11, 2  ;;  %v958_v12 = vrot.slane %v956_v53, 1 }
 0x895   :  { %v959_v51 = vsel %vm559_vm12, %v958_v12, %v957_v57 }
 0x896   :  { %v960_v13 = vpack.c.b16 %v959_v51, %v959_v51 }
 0x898   :  { %961 = vrot.lane.b32.xlu1 %v960_v13, %s2323_s30 }
 0x90a   :  { %v962_v14 = vpop.permute.xlu1 %961 }
 0x90b   :  { %2031 = vmatmul.msk.bf16.vlgmr.msra.gmra.mxu2 %vm148_vm6, %v962_v14 }
 0x98e   :  { %v975_v15 = vpop.f32.mrf.mxu2 }
 0x98f   :  { %v976_v16 = vadd.f32 %v2433_v18, %v975_v15 }
 0x991   :  { %v981_v17 = vrot.slane %v976_v16, 6  ;;  %v980_v19 = vrot.slane %v976_v16, 5 }
 0x993   :  { %1026 = vrot.lane.b32.xlu0 %v981_v17, %s2314_s20  ;;  %1024 = vrot.lane.b32.xlu2 %v980_v19, %s2314_s20  ;;  %v984_v2 = vadd.f32 %v980_v19, %v2482_v3  ;;  %v985_v36 = vadd.f32 %v981_v17, %v2486_v7 }
 0x995   :  { %v2032_v21 = vmul.f32 -1.442695, %v984_v2  ;;  %v2033_v37 = vmul.f32 -1.442695, %v985_v36 }
 0x996   :  { %v977_v22 = vpop.f32.mrf.mxu2 }
 0x997   :  { %2158 = vpow2.f32 %v2032_v21 }
 0x99d   :  { %v2159_v23 = vpop.eup %2158 }
 0x99e   :  { %v992_v20 = vadd.f32 1.0, %v2159_v23 }
 0x9a0   :  { %2160 = vrcp.f32 %v992_v20  ;;  %v1005_v25 = vand.u32 2147483648, %v992_v20  ;;  %v1003_v27 = vand.u32 2147483647, %v992_v20  ;;  %vm999_vm3 = vweird.f32 %v992_v20 }
 0x9a1   :  { %2162 = vpow2.f32 %v2033_v37 }
 0x9a2   :  { %v1006_v29 = vor.u32 1.1754944e-38, %v1005_v25  ;;  %vm1004_vm7 = vcmp.eq.f32.partialorder %v1003_v27, 8.507059e+37 }
 0x9a6   :  { %v2161_v32 = vpop.eup %2160 }
 0x9a7   :  { %v995_v56 = vmul.f32 %v2161_v32, %v992_v20  ;;  %vm1000_vm1 = vweird.f32 %v2161_v32  ;;  %v2163_v40 = vpop.eup %2162 }
 0x9a8   :  { %vm1001_vm4 = vmor %vm999_vm3, %vm1000_vm1  ;;  %v993_v41 = vadd.f32 1.0, %v2163_v40  ;;  %vm1559_vm1 = vcmask 1045504  }
 0x9a9   :  { %v996_v24 = vsub.f32 1.0, %v995_v56 }
 0x9aa   :  { %2164 = vrcp.f32 %v993_v41  ;;  %v1020_v39 = vand.u32 2147483648, %v993_v41  ;;  %vm1014_vm10 = vweird.f32 %v993_v41  ;;  %v1018_v47 = vand.u32 2147483647, %v993_v41 }
 0x9ab   :  { %v997_v26 = vmul.f32 %v2161_v32, %v996_v24 }
 0x9ac   :  { %v1021_v50 = vor.u32 1.1754944e-38, %v1020_v39  ;;  %vm1019_vm13 = vcmp.eq.f32.partialorder %v1018_v47, 8.507059e+37 }
 0x9ad   :  { %v998_v28 = vadd.f32 %v2161_v32, %v997_v26 }
 0x9af   :  { %v1002_v33 = vsel %vm1001_vm4, %v2161_v32, %v998_v28 }
 0x9b0   :  { %v1007_v30 = vsel %vm1004_vm7, %v1006_v29, %v1002_v33  ;;  %v2165_v31 = vpop.eup %2164 }
 0x9b1   :  { %v1062_v35 = vmul.f32 %v1058_v34, %v1007_v30  ;;  %v1010_v44 = vmul.f32 %v2165_v31, %v993_v41  ;;  %vm1015_vm9 = vweird.f32 %v2165_v31  ;;  %v1044_v5 = vsub.f32 1.0, %v1007_v30 }
 0x9b2   :  { %vm1016_vm11 = vmor %vm1014_vm10, %vm1015_vm9 }
 0x9b3   :  { %v1011_v9 = vsub.f32 1.0, %v1010_v44 }
 0x9b5   :  { %v1012_v45 = vmul.f32 %v2165_v31, %v1011_v9 }
 0x9b7   :  { %v1013_v46 = vadd.f32 %v2165_v31, %v1012_v45 }
 0x9b9   :  { %v1017_v48 = vsel %vm1016_vm11, %v2165_v31, %v1013_v46 }
 0x9ba   :  { %v1022_v54 = vsel %vm1019_vm13, %v1021_v50, %v1017_v48 }
 0x9bb   :  { %v1045_v0 = vsub.f32 1.0, %v1022_v54  ;;  %v1063_v10 = vmul.f32 %v1059_v1, %v1022_v54 }
 0x9ed   :  { %v1025_v42 = vpop.permute.xlu2 %1024 }
 0x9ee   :  { %v1030_v43 = vmul.f32 %v1025_v42, %v1007_v30 }
 0x9f0   :  { %1034 = vrot.lane.b32.xlu1 %v1030_v43, %s2314_s20 }
 0xa05   :  { %v1027_v52 = vpop.permute.xlu0 %1026 }
 0xa06   :  { %v1031_v55 = vmul.f32 %v1027_v52, %v1022_v54 }
 0xa08   :  { %1036 = vrot.lane.b32.xlu2 %v1031_v55, %s2314_s20 }
 0xa62   :  { %v1037_v58 = vpop.permute.xlu2 %1036  ;;  %v1035_v59 = vpop.permute.xlu1 %1034 }
 0xa63   :  { %v1041_v38 = vadd.f32 %v1037_v58, %v2486_v7  ;;  %v1040_v61 = vadd.f32 %v1035_v59, %v2482_v3 }
 0xa65   :  { %2166 = vtanh.f32 %v1041_v38 }
 0xa66   :  { %2168 = vtanh.f32 %v1040_v61 }
 0xa6b   :  { %v2167_v62 = vpop.eup %2166 }
 0xa6c   :  { %v2169_v63 = vpop.eup %2168  ;;  %1050 = vrot.lane.b32.xlu1 %v2167_v62, %s2323_s30 }
 0xa6d   :  { %1048 = vrot.lane.b32.xlu0 %v2169_v63, %s2323_s30 }
 0xade   :  { %v1051_v6 = vpop.permute.xlu1 %1050 }
 0xadf   :  { %v1049_v8 = vpop.permute.xlu0 %1048  ;;  %v1055_v11 = vmul.f32 %v1051_v6, %v1045_v0 }
 0xae0   :  { %v1054_v53 = vmul.f32 %v1049_v8, %v1044_v5 }
 0xae1   :  { %v2577_v49 = vadd.f32 %v1063_v10, %v1055_v11 }
 0xae2   :  { %v2579_v57 = vadd.f32 %v1062_v35, %v1054_v53 }
 0xae3   :  { %v1067_v12 = vpack.c.bf16 %v2577_v49, %v2577_v49  ;;  %v1536_v51 = vrot.slane %v2577_v49, 4  ;;  %v1174_v53 = vrot.slane %v2577_v49, 7 }
 0xae4   :  { %v1066_v13 = vpack.c.bf16 %v2579_v57, %v2579_v57  ;;  %v1535_v4 = vrot.slane %v2579_v57, 5  ;;  %v1173_v10 = vrot.slane %v2579_v57, 7 }
 0xae5   :  { %v1071_v14 = vunpack.c.l.b16 %v1067_v12 }
 0xae6   :  { %v1070_v15 = vunpack.c.l.b16 %v1066_v13  ;;  %v1537_v16 = vsel %vm571_vm2, %v1536_v51, %v1535_v4 }
 0xae7   :  { %v1073_v17 = vrot.slane %v1071_v14, 2  ;;  %v2590_v19 = vsel %vm1559_vm1, %v2560_v60, %v1537_v16 }
 0xae8   :  { %v1072_v2 = vrot.slane %v1070_v15, 3 }
 0xaea   :  { %v1074_v21 = vsel %vm559_vm12, %v1073_v17, %v1072_v2 }
 0xaeb   :  { %v1075_v22 = vpack.c.b16 %v1074_v21, %v1074_v21 }
 0xaed   :  { %1076 = vrot.lane.b32.xlu2 %v1075_v22, %s2323_s30 }
 0xb47   :  { %v1077_v23 = vpop.permute.xlu2 %1076 }
 0xb48   :  { %2034 = vmatmul.msk.bf16.vlgmr.msra.gmra.mxu3 %vm148_vm6, %v1077_v23 }
 0xbcb   :  { %v1090_v20 = vpop.f32.mrf.mxu3 }
 0xbcc   :  { %v1091_v32 = vadd.f32 %v2433_v18, %v1090_v20 }
 0xbce   :  { %v1096_v56 = vrot.slane %v1091_v32, 5  ;;  %v1095_v24 = vrot.slane %v1091_v32, 4 }
 0xbd0   :  { %1141 = vrot.lane.b32.xlu1 %v1096_v56, %s2314_s20  ;;  %1139 = vrot.lane.b32.xlu0 %v1095_v24, %s2314_s20  ;;  %v1100_v25 = vadd.f32 %v1096_v56, %v2486_v7  ;;  %v1099_v26 = vadd.f32 %v1095_v24, %v2482_v3 }
 0xbd2   :  { %v2036_v27 = vmul.f32 -1.442695, %v1100_v25  ;;  %v2035_v28 = vmul.f32 -1.442695, %v1099_v26 }
 0xbd3   :  { %v1092_v60 = vpop.f32.mrf.mxu3 }
 0xbd4   :  { %2170 = vpow2.f32 %v2036_v27  ;;  %v2619_v27 = vld [vmem:[#allocation6 + $0x3] ss:$0 sm:$0xff] }
 0xbd5   :  { %2172 = vpow2.f32 %v2035_v28 }
 0xbda   :  { %v2171_v29 = vpop.eup %2170 }
 0xbdb   :  { %v2173_v33 = vpop.eup %2172  ;;  %v1108_v34 = vadd.f32 1.0, %v2171_v29 }
 0xbdc   :  { %v1107_v30 = vadd.f32 1.0, %v2173_v33 }
 0xbdd   :  { %2174 = vrcp.f32 %v1108_v34  ;;  %vm1129_vm7 = vweird.f32 %v1108_v34  ;;  %v1135_v9 = vand.u32 2147483648, %v1108_v34  ;;  %v1133_v46 = vand.u32 2147483647, %v1108_v34 }
 0xbde   :  { %2176 = vrcp.f32 %v1107_v30  ;;  %v1120_v45 = vand.u32 2147483648, %v1107_v30  ;;  %vm1114_vm10 = vweird.f32 %v1107_v30  ;;  %v1118_v39 = vand.u32 2147483647, %v1107_v30 }
 0xbdf   :  { %v1136_v50 = vor.u32 1.1754944e-38, %v1135_v9  ;;  %vm1134_vm13 = vcmp.eq.f32.partialorder %v1133_v46, 8.507059e+37 }
 0xbe0   :  { %v1121_v52 = vor.u32 1.1754944e-38, %v1120_v45  ;;  %vm1119_vm5 = vcmp.eq.f32.partialorder %v1118_v39, 8.507059e+37 }
 0xbe3   :  { %v2175_v18 = vpop.eup %2174 }
 0xbe4   :  { %v2177_v35 = vpop.eup %2176  ;;  %v1125_v36 = vmul.f32 %v2175_v18, %v1108_v34  ;;  %vm1130_vm3 = vweird.f32 %v2175_v18 }
 0xbe5   :  { %v1110_v37 = vmul.f32 %v2177_v35, %v1107_v30  ;;  %vm1115_vm4 = vweird.f32 %v2177_v35  ;;  %vm1131_vm9 = vmor %vm1129_vm7, %vm1130_vm3 }
 0xbe6   :  { %v1126_v40 = vsub.f32 1.0, %v1125_v36  ;;  %vm1116_vm11 = vmor %vm1114_vm10, %vm1115_vm4 }
 0xbe7   :  { %v1111_v41 = vsub.f32 1.0, %v1110_v37 }
 0xbe8   :  { %v1127_v42 = vmul.f32 %v2175_v18, %v1126_v40 }
 0xbe9   :  { %v1112_v43 = vmul.f32 %v2177_v35, %v1111_v41 }
 0xbea   :  { %v1128_v31 = vadd.f32 %v2175_v18, %v1127_v42 }
 0xbeb   :  { %v1113_v44 = vadd.f32 %v2177_v35, %v1112_v43 }
 0xbec   :  { %v1132_v47 = vsel %vm1131_vm9, %v2175_v18, %v1128_v31 }
 0xbed   :  { %v1117_v48 = vsel %vm1116_vm11, %v2177_v35, %v1113_v44  ;;  %v1137_v55 = vsel %vm1134_vm13, %v1136_v50, %v1132_v47 }
 0xbee   :  { %v1122_v59 = vsel %vm1119_vm5, %v1121_v52, %v1117_v48  ;;  %v1160_v11 = vsub.f32 1.0, %v1137_v55  ;;  %v1178_v14 = vmul.f32 %v1174_v53, %v1137_v55 }
 0xbef   :  { %v1159_v8 = vsub.f32 1.0, %v1122_v59  ;;  %v1177_v13 = vmul.f32 %v1173_v10, %v1122_v59 }
 0xc42   :  { %v1142_v54 = vpop.permute.xlu1 %1141  ;;  %v1140_v58 = vpop.permute.xlu0 %1139 }
 0xc43   :  { %v1146_v38 = vmul.f32 %v1142_v54, %v1137_v55  ;;  %v1145_v61 = vmul.f32 %v1140_v58, %v1122_v59 }
 0xc45   :  { %1151 = vrot.lane.b32.xlu0 %v1146_v38, %s2314_s20  ;;  %1149 = vrot.lane.b32.xlu2 %v1145_v61, %s2314_s20 }
 0xc9f   :  { %v1150_v62 = vpop.permute.xlu2 %1149 }
 0xca0   :  { %v1155_v63 = vadd.f32 %v1150_v62, %v2482_v3 }
 0xca2   :  { %2178 = vtanh.f32 %v1155_v63 }
 0xca8   :  { %v2179_v0 = vpop.eup %2178 }
 0xca9   :  { %1163 = vrot.lane.b32.xlu1 %v2179_v0, %s2323_s30 }
 0xcb7   :  { %v1152_v1 = vpop.permute.xlu0 %1151 }
 0xcb8   :  { %v1156_v5 = vadd.f32 %v1152_v1, %v2486_v7 }
 0xcba   :  { %2180 = vtanh.f32 %v1156_v5 }
 0xcc0   :  { %v2181_v6 = vpop.eup %2180 }
 0xcc1   :  { %1165 = vrot.lane.b32.xlu2 %v2181_v6, %s2323_s30 }
 0xd1b   :  { %v1164_v12 = vpop.permute.xlu1 %1163  ;;  %v1166_v51 = vpop.permute.xlu2 %1165 }
 0xd1c   :  { %v1169_v4 = vmul.f32 %v1164_v12, %v1159_v8  ;;  %v1170_v15 = vmul.f32 %v1166_v51, %v1160_v11 }
 0xd1e   :  { %v2608_v16 = vadd.f32 %v1177_v13, %v1169_v4  ;;  %v1180_v17 = vadd.f32 %v1178_v14, %v1170_v15 }
 0xd20   :  { %v1181_v2 = vpack.c.bf16 %v2608_v16, %v2608_v16  ;;  %v1539_v21 = vrot.slane %v2608_v16, 4  ;;  %v1182_v22 = vpack.c.bf16 %v1180_v17, %v1180_v17  ;;  %v1540_v23 = vrot.slane %v1180_v17, 3 }
 0xd21   :  { %v1289_v46 = vrot.slane %v1180_v17, 7  ;;  %v1288_v17 = vrot.slane %v2608_v16, 7 }
 0xd22   :  { %v1185_v57 = vunpack.c.l.b16 %v1181_v2  ;;  %v1186_v20 = vunpack.c.l.b16 %v1182_v22  ;;  %v2614_v49 = vsel %vm559_vm12, %v1540_v23, %v1539_v21 }
 0xd24   :  { %v1187_v32 = vrot.slane %v1185_v57, 4  ;;  %v1188_v56 = vrot.slane %v1186_v20, 3 }
 0xd26   :  { %v1189_v24 = vsel %vm559_vm12, %v1188_v56, %v1187_v32 }
 0xd27   :  { %v1190_v60 = vpack.c.b16 %v1189_v24, %v1189_v24 }
 0xd29   :  { %1191 = vrot.lane.b32.xlu0 %v1190_v60, %s2323_s30 }
 0xd9b   :  { %v1192_v25 = vpop.permute.xlu0 %1191 }
 0xd9c   :  { %2037 = vmatmul.msk.bf16.vlgmr.msrb.gmra.mxu0 %vm148_vm6, %v1192_v25 }
 0xe19   :  { %v1205_v26 = vpop.f32.mrf.mxu0 }
 0xe1a   :  { %v1206_v28 = vadd.f32 %v2619_v27, %v1205_v26 }
 0xe1c   :  { %v1211_v29 = vrot.slane %v1206_v28, 4  ;;  %v1210_v33 = vrot.slane %v1206_v28, 3 }
 0xe1e   :  { %1256 = vrot.lane.b32.xlu2 %v1211_v29, %s2314_s20  ;;  %v1215_v34 = vadd.f32 %v1211_v29, %v2486_v7  ;;  %1254 = vrot.lane.b32.xlu1 %v1210_v33, %s2314_s20  ;;  %v1214_v48 = vadd.f32 %v1210_v33, %v2482_v3 }
 0xe20   :  { %v2039_v30 = vmul.f32 -1.442695, %v1215_v34  ;;  %v2038_v50 = vmul.f32 -1.442695, %v1214_v48 }
 0xe21   :  { %v1207_v18 = vpop.f32.mrf.mxu0 }
 0xe22   :  { %2182 = vpow2.f32 %v2039_v30 }
 0xe28   :  { %v2183_v35 = vpop.eup %2182 }
 0xe29   :  { %v1223_v36 = vadd.f32 1.0, %v2183_v35 }
 0xe2b   :  { %2184 = vrcp.f32 %v1223_v36  ;;  %v1250_v42 = vand.u32 2147483648, %v1223_v36  ;;  %v1248_v31 = vand.u32 2147483647, %v1223_v36  ;;  %vm1244_vm3 = vweird.f32 %v1223_v36 }
 0xe2c   :  { %2186 = vpow2.f32 %v2038_v50 }
 0xe2d   :  { %v1251_v9 = vor.u32 1.1754944e-38, %v1250_v42  ;;  %vm1249_vm7 = vcmp.eq.f32.partialorder %v1248_v31, 8.507059e+37 }
 0xe31   :  { %v2185_v37 = vpop.eup %2184 }
 0xe32   :  { %v1240_v40 = vmul.f32 %v2185_v37, %v1223_v36  ;;  %vm1245_vm5 = vweird.f32 %v2185_v37  ;;  %v2187_v52 = vpop.eup %2186 }
 0xe33   :  { %vm1246_vm4 = vmor %vm1244_vm3, %vm1245_vm5  ;;  %v1222_v54 = vadd.f32 1.0, %v2187_v52 }
 0xe34   :  { %v1241_v41 = vsub.f32 1.0, %v1240_v40 }
 0xe35   :  { %2188 = vrcp.f32 %v1222_v54  ;;  %v1235_v0 = vand.u32 2147483648, %v1222_v54  ;;  %vm1229_vm10 = vweird.f32 %v1222_v54  ;;  %v1233_v1 = vand.u32 2147483647, %v1222_v54 }
 0xe36   :  { %v1242_v43 = vmul.f32 %v2185_v37, %v1241_v41 }
 0xe37   :  { %v1236_v6 = vor.u32 1.1754944e-38, %v1235_v0  ;;  %vm1234_vm13 = vcmp.eq.f32.partialorder %v1233_v1, 8.507059e+37 }
 0xe38   :  { %v1243_v44 = vadd.f32 %v2185_v37, %v1242_v43 }
 0xe3a   :  { %v1247_v45 = vsel %vm1246_vm4, %v2185_v37, %v1243_v44 }
 0xe3b   :  { %v1252_v39 = vsel %vm1249_vm7, %v1251_v9, %v1247_v45  ;;  %v2189_v59 = vpop.eup %2188 }
 0xe3c   :  { %v1293_v47 = vmul.f32 %v1289_v46, %v1252_v39  ;;  %v1225_v38 = vmul.f32 %v2189_v59, %v1222_v54  ;;  %vm1230_vm9 = vweird.f32 %v2189_v59  ;;  %v1275_v2 = vsub.f32 1.0, %v1252_v39 }
 0xe3d   :  { %vm1231_vm11 = vmor %vm1229_vm10, %vm1230_vm9 }
 0xe3e   :  { %v1226_v61 = vsub.f32 1.0, %v1225_v38 }
 0xe40   :  { %v1227_v62 = vmul.f32 %v2189_v59, %v1226_v61 }
 0xe42   :  { %v1228_v63 = vadd.f32 %v2189_v59, %v1227_v62 }
 0xe44   :  { %v1232_v5 = vsel %vm1231_vm11, %v2189_v59, %v1228_v63 }
 0xe45   :  { %v1237_v10 = vsel %vm1234_vm13, %v1236_v6, %v1232_v5 }
 0xe46   :  { %v1274_v15 = vsub.f32 1.0, %v1237_v10  ;;  %v1292_v23 = vmul.f32 %v1288_v17, %v1237_v10 }
 0xe78   :  { %v1257_v55 = vpop.permute.xlu2 %1256 }
 0xe79   :  { %v1261_v58 = vmul.f32 %v1257_v55, %v1252_v39 }
 0xe7b   :  { %1266 = vrot.lane.b32.xlu1 %v1261_v58, %s2314_s20 }
 0xe90   :  { %v1255_v8 = vpop.permute.xlu1 %1254 }
 0xe91   :  { %v1260_v11 = vmul.f32 %v1255_v8, %v1237_v10 }
 0xe93   :  { %1264 = vrot.lane.b32.xlu0 %v1260_v11, %s2314_s20 }
 0xeed   :  { %v1267_v53 = vpop.permute.xlu1 %1266 }
 0xeee   :  { %v1271_v12 = vadd.f32 %v1267_v53, %v2486_v7 }
 0xef0   :  { %2190 = vtanh.f32 %v1271_v12 }
 0xef6   :  { %v2191_v51 = vpop.eup %2190 }
 0xef7   :  { %1280 = vrot.lane.b32.xlu0 %v2191_v51, %s2323_s30 }
 0xf05   :  { %v1265_v13 = vpop.permute.xlu0 %1264 }
 0xf06   :  { %v1270_v4 = vadd.f32 %v1265_v13, %v2482_v3 }
 0xf08   :  { %2192 = vtanh.f32 %v1270_v4 }
 0xf0e   :  { %v2193_v14 = vpop.eup %2192 }
 0xf0f   :  { %1278 = vrot.lane.b32.xlu2 %v2193_v14, %s2323_s30 }
 0xf69   :  { %v1279_v21 = vpop.permute.xlu2 %1278  ;;  %v1281_v22 = vpop.permute.xlu0 %1280 }
 0xf6a   :  { %v1284_v57 = vmul.f32 %v1279_v21, %v1274_v15  ;;  %v1285_v20 = vmul.f32 %v1281_v22, %v1275_v2 }
 0xf6c   :  { %v1294_v32 = vadd.f32 %v1292_v23, %v1284_v57  ;;  %v2633_v56 = vadd.f32 %v1293_v47, %v1285_v20 }
 0xf6e   :  { %v1296_v24 = vpack.c.bf16 %v1294_v32, %v1294_v32  ;;  %v1543_v60 = vrot.slane %v1294_v32, 3  ;;  %v1297_v25 = vpack.c.bf16 %v2633_v56, %v2633_v56  ;;  %v1544_v26 = vrot.slane %v2633_v56, 2 }
 0xf6f   :  { %v1403_v58 = vrot.slane %v1294_v32, 7 }
 0xf70   :  { %v1300_v28 = vunpack.c.l.b16 %v1296_v24  ;;  %v1301_v29 = vunpack.c.l.b16 %v1297_v25  ;;  %v1545_v16 = vsel %vm563_vm14, %v1544_v26, %v1543_v60  ;;  %v1404_v24 = vrot.slane %v2633_v56, 7 }
 0xf71   :  { %v2641_v33 = vsel %vm1556_vm15, %v2614_v49, %v1545_v16 }
 0xf72   :  { %v1302_v34 = vrot.slane %v1300_v28, 5  ;;  %v1303_v30 = vrot.slane %v1301_v29, 4 }
 0xf74   :  { %v1304_v18 = vsel %vm559_vm12, %v1303_v30, %v1302_v34 }
 0xf75   :  { %v1305_v35 = vpack.c.b16 %v1304_v18, %v1304_v18 }
 0xf77   :  { %1306 = vrot.lane.b32.xlu1 %v1305_v35, %s2323_s30 }
 0xfe9   :  { %v1307_v36 = vpop.permute.xlu1 %1306 }
 0xfea   :  { %2040 = vmatmul.msk.bf16.vlgmr.msrb.gmra.mxu1 %vm148_vm6, %v1307_v36 }
0x1067   :  { %v1320_v37 = vpop.f32.mrf.mxu1 }
0x1068   :  { %v1321_v40 = vadd.f32 %v2619_v27, %v1320_v37 }
0x106a   :  { %v1326_v41 = vrot.slane %v1321_v40, 3  ;;  %v1325_v42 = vrot.slane %v1321_v40, 2 }
0x106c   :  { %1371 = vrot.lane.b32.xlu0 %v1326_v41, %s2314_s20  ;;  %1369 = vrot.lane.b32.xlu2 %v1325_v42, %s2314_s20  ;;  %v1329_v49 = vadd.f32 %v1325_v42, %v2482_v3  ;;  %v1330_v61 = vadd.f32 %v1326_v41, %v2486_v7 }
0x106e   :  { %v2041_v43 = vmul.f32 -1.442695, %v1329_v49  ;;  %v2042_v62 = vmul.f32 -1.442695, %v1330_v61 }
0x106f   :  { %v1322_v31 = vpop.f32.mrf.mxu1 }
0x1070   :  { %2194 = vpow2.f32 %v2041_v43 }
0x1076   :  { %v2195_v44 = vpop.eup %2194 }
0x1077   :  { %v1337_v9 = vadd.f32 1.0, %v2195_v44 }
0x1079   :  { %2196 = vrcp.f32 %v1337_v9  ;;  %v1350_v47 = vand.u32 2147483648, %v1337_v9  ;;  %v1348_v50 = vand.u32 2147483647, %v1337_v9  ;;  %vm1344_vm15 = vweird.f32 %v1337_v9 }
0x107a   :  { %2198 = vpow2.f32 %v2042_v62 }
0x107b   :  { %v1351_v54 = vor.u32 1.1754944e-38, %v1350_v47  ;;  %vm1349_vm3 = vcmp.eq.f32.partialorder %v1348_v50, 8.507059e+37 }
0x107f   :  { %v2197_v45 = vpop.eup %2196 }
0x1080   :  { %v1340_v46 = vmul.f32 %v2197_v45, %v1337_v9  ;;  %vm1345_vm14 = vweird.f32 %v2197_v45  ;;  %v2199_v63 = vpop.eup %2198 }
0x1081   :  { %vm1346_vm5 = vmor %vm1344_vm15, %vm1345_vm14  ;;  %v1338_v0 = vadd.f32 1.0, %v2199_v63 }
0x1082   :  { %v1341_v39 = vsub.f32 1.0, %v1340_v46 }
0x1083   :  { %2200 = vrcp.f32 %v1338_v0  ;;  %v1365_v12 = vand.u32 2147483648, %v1338_v0  ;;  %vm1359_vm7 = vweird.f32 %v1338_v0  ;;  %v1363_v51 = vand.u32 2147483647, %v1338_v0 }
0x1084   :  { %v1342_v48 = vmul.f32 %v2197_v45, %v1341_v39 }
0x1085   :  { %v1366_v4 = vor.u32 1.1754944e-38, %v1365_v12  ;;  %vm1364_vm10 = vcmp.eq.f32.partialorder %v1363_v51, 8.507059e+37 }
0x1086   :  { %v1343_v52 = vadd.f32 %v2197_v45, %v1342_v48 }
0x1088   :  { %v1347_v55 = vsel %vm1346_vm5, %v2197_v45, %v1343_v52 }
0x1089   :  { %v1352_v59 = vsel %vm1349_vm3, %v1351_v54, %v1347_v55  ;;  %v2201_v6 = vpop.eup %2200 }
0x108a   :  { %v1407_v38 = vmul.f32 %v1403_v58, %v1352_v59  ;;  %v1355_v8 = vmul.f32 %v2201_v6, %v1338_v0  ;;  %vm1360_vm4 = vweird.f32 %v2201_v6  ;;  %v1389_v60 = vsub.f32 1.0, %v1352_v59 }
0x108b   :  { %vm1361_vm9 = vmor %vm1359_vm7, %vm1360_vm4 }
0x108c   :  { %v1356_v10 = vsub.f32 1.0, %v1355_v8 }
0x108e   :  { %v1357_v11 = vmul.f32 %v2201_v6, %v1356_v10 }
0x1090   :  { %v1358_v53 = vadd.f32 %v2201_v6, %v1357_v11 }
0x1092   :  { %v1362_v13 = vsel %vm1361_vm9, %v2201_v6, %v1358_v53  ;;  %vm1836_vm9 = vcmask 517376  }
0x1093   :  { %v1367_v15 = vsel %vm1364_vm10, %v1366_v4, %v1362_v13 }
0x1094   :  { %v1390_v32 = vsub.f32 1.0, %v1367_v15  ;;  %v1408_v28 = vmul.f32 %v1404_v24, %v1367_v15 }
0x10c6   :  { %v1370_v1 = vpop.permute.xlu2 %1369 }
0x10c7   :  { %v1375_v5 = vmul.f32 %v1370_v1, %v1352_v59 }
0x10c9   :  { %1379 = vrot.lane.b32.xlu1 %v1375_v5, %s2314_s20 }
0x10de   :  { %v1372_v14 = vpop.permute.xlu0 %1371 }
0x10df   :  { %v1376_v17 = vmul.f32 %v1372_v14, %v1367_v15 }
0x10e1   :  { %1381 = vrot.lane.b32.xlu2 %v1376_v17, %s2314_s20 }
0x113b   :  { %v1382_v2 = vpop.permute.xlu2 %1381  ;;  %v1380_v21 = vpop.permute.xlu1 %1379 }
0x113c   :  { %v1386_v22 = vadd.f32 %v1382_v2, %v2486_v7  ;;  %v1385_v23 = vadd.f32 %v1380_v21, %v2482_v3 }
0x113e   :  { %2202 = vtanh.f32 %v1386_v22 }
0x113f   :  { %2204 = vtanh.f32 %v1385_v23 }
0x1144   :  { %v2203_v57 = vpop.eup %2202 }
0x1145   :  { %v2205_v20 = vpop.eup %2204  ;;  %1395 = vrot.lane.b32.xlu1 %v2203_v57, %s2323_s30 }
0x1146   :  { %1393 = vrot.lane.b32.xlu0 %v2205_v20, %s2323_s30 }
0x11b7   :  { %v1396_v25 = vpop.permute.xlu1 %1395 }
0x11b8   :  { %v1394_v26 = vpop.permute.xlu0 %1393  ;;  %v1400_v29 = vmul.f32 %v1396_v25, %v1390_v32 }
0x11b9   :  { %v1399_v16 = vmul.f32 %v1394_v26, %v1389_v60 }
0x11ba   :  { %v2658_v34 = vadd.f32 %v1408_v28, %v1400_v29  ;;  %v2092_v28 = vld [vmem:[#allocation4 + $0x68] sm:$0xff]  ;;  %v2091_v29 = vld [vmem:[#allocation4 + $0x60] sm:$0xff] }
0x11bb   :  { %v2660_v30 = vadd.f32 %v1407_v38, %v1399_v16  ;;  %1595 = vmatpush.bf16.msrb.mxu3 %v2092_v28 }
0x11bc   :  { %v1412_v18 = vpack.c.bf16 %v2658_v34, %v2658_v34  ;;  %v1548_v35 = vrot.slane %v2658_v34, 1 }
0x11bd   :  { %v1411_v36 = vpack.c.bf16 %v2660_v30, %v2660_v30  ;;  %v1547_v56 = vrot.slane %v2660_v30, 2 }
0x11be   :  { %v1416_v37 = vunpack.c.l.b16 %v1412_v18  ;;  %v1518_v18 = vrot.slane %v2660_v30, 7 }
0x11bf   :  { %v1415_v40 = vunpack.c.l.b16 %v1411_v36  ;;  %v1549_v41 = vsel %vm567_vm0, %v1548_v35, %v1547_v56  ;;  %1596 = vmatpush.bf16.msrb.mxu3 %v2091_v29 }
0x11c0   :  { %v1418_v42 = vrot.slane %v1416_v37, 5  ;;  %v2671_v49 = vsel %vm337_vm8, %v2641_v33, %v1549_v41 }
0x11c1   :  { %v1417_v43 = vrot.slane %v1415_v40, 6  ;;  %v1519_v40 = vrot.slane %v2658_v34, 7  ;;  %v2118_v34 = vld [vmem:[#allocation6 + $0x4] ss:$0 sm:$0xff] }
0x11c3   :  { %v1419_v31 = vsel %vm559_vm12, %v1418_v42, %v1417_v43 }
0x11c4   :  { %v1420_v44 = vpack.c.b16 %v1419_v31, %v1419_v31 }
0x11c6   :  { %1421 = vrot.lane.b32.xlu2 %v1420_v44, %s2323_s30 }
0x1220   :  { %v1422_v9 = vpop.permute.xlu2 %1421 }
0x1221   :  { %2043 = vmatmul.msk.bf16.vlgmr.msrb.gmra.mxu2 %vm148_vm6, %v1422_v9 }
0x12a4   :  { %v1435_v45 = vpop.f32.mrf.mxu2 }
0x12a5   :  { %v1436_v46 = vadd.f32 %v2619_v27, %v1435_v45 }
0x12a7   :  { %v1441_v39 = vrot.slane %v1436_v46, 2  ;;  %v1440_v47 = vrot.slane %v1436_v46, 1 }
0x12a9   :  { %1486 = vrot.lane.b32.xlu1 %v1441_v39, %s2314_s20  ;;  %1484 = vrot.lane.b32.xlu0 %v1440_v47, %s2314_s20  ;;  %v1445_v48 = vadd.f32 %v1441_v39, %v2486_v7  ;;  %v1444_v50 = vadd.f32 %v1440_v47, %v2482_v3 }
0x12ab   :  { %v2045_v52 = vmul.f32 -1.442695, %v1445_v48  ;;  %v2044_v54 = vmul.f32 -1.442695, %v1444_v50 }
0x12ac   :  { %v1437_v33 = vpop.f32.mrf.mxu2 }
0x12ad   :  { %2206 = vpow2.f32 %v2045_v52 }
0x12ae   :  { %2208 = vpow2.f32 %v2044_v54 }
0x12b3   :  { %v2207_v55 = vpop.eup %2206 }
0x12b4   :  { %v2209_v58 = vpop.eup %2208  ;;  %v1453_v59 = vadd.f32 1.0, %v2207_v55 }
0x12b5   :  { %v1452_v38 = vadd.f32 1.0, %v2209_v58 }
0x12b6   :  { %2210 = vrcp.f32 %v1453_v59  ;;  %vm1474_vm0 = vweird.f32 %v1453_v59  ;;  %v1480_v11 = vand.u32 2147483648, %v1453_v59  ;;  %v1478_v12 = vand.u32 2147483647, %v1453_v59 }
0x12b7   :  { %2212 = vrcp.f32 %v1452_v38  ;;  %v1465_v53 = vand.u32 2147483648, %v1452_v38  ;;  %vm1459_vm13 = vweird.f32 %v1452_v38  ;;  %v1463_v51 = vand.u32 2147483647, %v1452_v38 }
0x12b8   :  { %v1481_v14 = vor.u32 1.1754944e-38, %v1480_v11  ;;  %vm1479_vm15 = vcmp.eq.f32.partialorder %v1478_v12, 8.507059e+37 }
0x12b9   :  { %v1466_v15 = vor.u32 1.1754944e-38, %v1465_v53  ;;  %vm1464_vm5 = vcmp.eq.f32.partialorder %v1463_v51, 8.507059e+37 }
0x12bc   :  { %v2211_v27 = vpop.eup %2210 }
0x12bd   :  { %v2213_v61 = vpop.eup %2212  ;;  %v1470_v62 = vmul.f32 %v2211_v27, %v1453_v59  ;;  %vm1475_vm8 = vweird.f32 %v2211_v27 }
0x12be   :  { %v1455_v63 = vmul.f32 %v2213_v61, %v1452_v38  ;;  %vm1460_vm12 = vweird.f32 %v2213_v61  ;;  %vm1476_vm11 = vmor %vm1474_vm0, %vm1475_vm8  ;;  %vm1958_vm0 = vcmask 1024  }
0x12bf   :  { %v1471_v0 = vsub.f32 1.0, %v1470_v62  ;;  %vm1461_vm14 = vmor %vm1459_vm13, %vm1460_vm12  ;;  %vm2744_vm12 = vcmask 130048  }
0x12c0   :  { %v1456_v1 = vsub.f32 1.0, %v1455_v63 }
0x12c1   :  { %v1472_v5 = vmul.f32 %v2211_v27, %v1471_v0 }
0x12c2   :  { %v1457_v6 = vmul.f32 %v2213_v61, %v1456_v1 }
0x12c3   :  { %v1473_v8 = vadd.f32 %v2211_v27, %v1472_v5 }
0x12c4   :  { %v1458_v10 = vadd.f32 %v2213_v61, %v1457_v6 }
0x12c5   :  { %v1477_v13 = vsel %vm1476_vm11, %v2211_v27, %v1473_v8 }
0x12c6   :  { %v1462_v4 = vsel %vm1461_vm14, %v2213_v61, %v1458_v10  ;;  %v1482_v2 = vsel %vm1479_vm15, %v1481_v14, %v1477_v13 }
0x12c7   :  { %v1467_v22 = vsel %vm1464_vm5, %v1466_v15, %v1462_v4  ;;  %v1505_v35 = vsub.f32 1.0, %v1482_v2  ;;  %v1523_v42 = vmul.f32 %v1519_v40, %v1482_v2 }
0x12c8   :  { %v1504_v16 = vsub.f32 1.0, %v1467_v22  ;;  %v1522_v56 = vmul.f32 %v1518_v18, %v1467_v22 }
0x131b   :  { %v1487_v17 = vpop.permute.xlu1 %1486  ;;  %v1485_v21 = vpop.permute.xlu0 %1484 }
0x131c   :  { %v1491_v23 = vmul.f32 %v1487_v17, %v1482_v2  ;;  %v1490_v57 = vmul.f32 %v1485_v21, %v1467_v22 }
0x131e   :  { %1496 = vrot.lane.b32.xlu0 %v1491_v23, %s2314_s20  ;;  %1494 = vrot.lane.b32.xlu2 %v1490_v57, %s2314_s20 }
0x1378   :  { %v1495_v20 = vpop.permute.xlu2 %1494 }
0x1379   :  { %v1500_v32 = vadd.f32 %v1495_v20, %v2482_v3 }
0x137b   :  { %2214 = vtanh.f32 %v1500_v32 }
0x1381   :  { %v2215_v24 = vpop.eup %2214 }
0x1382   :  { %1508 = vrot.lane.b32.xlu1 %v2215_v24, %s2323_s30 }
0x1390   :  { %v1497_v60 = vpop.permute.xlu0 %1496 }
0x1391   :  { %v1501_v25 = vadd.f32 %v1497_v60, %v2486_v7 }
0x1393   :  { %2216 = vtanh.f32 %v1501_v25 }
0x1399   :  { %v2217_v26 = vpop.eup %2216 }
0x139a   :  { %1510 = vrot.lane.b32.xlu2 %v2217_v26, %s2323_s30 }
0x13f4   :  { %v1509_v3 = vpop.permute.xlu1 %1508  ;;  %v1511_v36 = vpop.permute.xlu2 %1510 }
0x13f5   :  { %v1514_v37 = vmul.f32 %v1509_v3, %v1504_v16  ;;  %v1515_v41 = vmul.f32 %v1511_v36, %v1505_v35 }
0x13f7   :  { %v1524_v7 = vadd.f32 %v1522_v56, %v1514_v37  ;;  %v1525_v31 = vadd.f32 %v1523_v42, %v1515_v41 }
0x13f9   :  { %v1553_v43 = vrot.slane %v1524_v7, 1 }
0x13fb   :  { %v1554_v44 = vsel %vm571_vm2, %v1525_v31, %v1553_v43  ;;  %vm1617_vm2 = vcmask 9216  }
0x13fc   :  { %v2692_v9 = vsel %vm1559_vm1, %v2671_v49, %v1554_v44 }
0x13fd   :  { %v1564_v30 = vpack.c.bf16 %v2692_v9, %v2590_v19 }
0x13ff   :  { %1572 = vrot.lane.b32.xlu0 %v1564_v30, %s2323_s30 }
0x1471   :  { %v1573_v45 = vpop.permute.xlu0 %1572 }
0x1472   :  { %2054 = vmatmul.msk.bf16.vlgmr.msrb.gmra.mxu3 %vm148_vm6, %v1573_v45 }
0x14f5   :  { %v1598_v46 = vpop.f32.mrf.mxu3 }
0x14f6   :  { %v1599_v39 = vadd.f32 %v2118_v34, %v1598_v46 }
0x14f8   :  { %v1605_v47 = vrot.slane %v1599_v39, 2  ;;  %v1606_v33 = vrot.slane %v1599_v39, 4  ;;  %v1607_v50 = vrot.slane %v1599_v39, 6  ;;  %v1618_v59 = vsel %vm1617_vm2, %v1599_v39, -inf }
0x14fa   :  { %v1619_v38 = vsel %vm1617_vm2, %v1605_v47, -inf  ;;  %v1620_v27 = vsel %vm1617_vm2, %v1606_v33, -inf  ;;  %v1621_v61 = vsel %vm1617_vm2, %v1607_v50, -inf }
0x14fd   :  { %v1600_v48 = vpop.f32.mrf.mxu3 }
0x14fe   :  { %v1601_v52 = vadd.f32 %v2118_v34, %v1600_v48 }
0x1500   :  { %v1608_v54 = vrot.slane %v1601_v52, 2  ;;  %v1609_v49 = vrot.slane %v1601_v52, 4  ;;  %v1610_v55 = vrot.slane %v1601_v52, 6  ;;  %v1622_v58 = vsel %vm1617_vm2, %v1601_v52, -inf }
0x1501   :  { %v1623_v1 = vmax.f32 %v1618_v59, %v1622_v58 }
0x1502   :  { %v1624_v62 = vsel %vm1617_vm2, %v1608_v54, -inf  ;;  %v1626_v63 = vsel %vm1617_vm2, %v1609_v49, -inf  ;;  %v1628_v0 = vsel %vm1617_vm2, %v1610_v55, -inf }
0x1503   :  { %v1625_v5 = vmax.f32 %v1619_v38, %v1624_v62  ;;  %v1627_v6 = vmax.f32 %v1620_v27, %v1626_v63  ;;  %v1629_v8 = vmax.f32 %v1621_v61, %v1628_v0 }
0x1505   :  { %v1630_v10 = vmax.f32 %v1623_v1, %v1625_v5  ;;  %v1631_v11 = vmax.f32 %v1627_v6, %v1629_v8 }
0x1507   :  { %v1632_v53 = vmax.f32 %v1630_v10, %v1631_v11 }
0x1509   :  { %v1633_v12 = vsub.f32 %v1599_v39, %v1632_v53  ;;  %v1634_v51 = vsub.f32 %v1605_v47, %v1632_v53  ;;  %v1635_v13 = vsub.f32 %v1606_v33, %v1632_v53  ;;  %v1636_v4 = vsub.f32 %v1607_v50, %v1632_v53 }
0x150a   :  { %v1637_v15 = vsub.f32 %v1601_v52, %v1632_v53  ;;  %v1638_v21 = vsub.f32 %v1608_v54, %v1632_v53  ;;  %v1639_v23 = vsub.f32 %v1609_v49, %v1632_v53  ;;  %v1640_v20 = vsub.f32 %v1610_v55, %v1632_v53 }
0x150b   :  { %v1641_v14 = vmul.f32 1.442695, %v1633_v12  ;;  %v1643_v17 = vmul.f32 1.442695, %v1634_v51  ;;  %v1645_v2 = vmul.f32 1.442695, %v1635_v13 }
0x150c   :  { %v1647_v22 = vmul.f32 1.442695, %v1636_v4  ;;  %v1649_v57 = vmul.f32 1.442695, %v1637_v15  ;;  %v1651_v32 = vmul.f32 1.442695, %v1638_v21 }
0x150d   :  { %2218 = vpow2.f32 %v1641_v14  ;;  %v1653_v24 = vmul.f32 1.442695, %v1639_v23  ;;  %v1655_v26 = vmul.f32 1.442695, %v1640_v20 }
0x150e   :  { %2220 = vpow2.f32 %v1643_v17 }
0x150f   :  { %2222 = vpow2.f32 %v1645_v2 }
0x1510   :  { %2224 = vpow2.f32 %v1647_v22 }
0x1511   :  { %2226 = vpow2.f32 %v1649_v57 }
0x1512   :  { %2228 = vpow2.f32 %v1651_v32 }
0x1513   :  { %v2219_v60 = vpop.eup %2218  ;;  %2230 = vpow2.f32 %v1653_v24 }
0x1514   :  { %v2221_v25 = vpop.eup %2220  ;;  %v1657_v28 = vsel %vm1617_vm2, %v2219_v60, 0.0  ;;  %2232 = vpow2.f32 %v1655_v26 }
0x1515   :  { %v2223_v29 = vpop.eup %2222  ;;  %v1658_v16 = vsel %vm1617_vm2, %v2221_v25, 0.0 }
0x1516   :  { %v2225_v18 = vpop.eup %2224  ;;  %v1659_v35 = vadd.f32 %v1658_v16, %v1657_v28  ;;  %v1660_v3 = vsel %vm1617_vm2, %v2223_v29, 0.0 }
0x1517   :  { %v2227_v36 = vpop.eup %2226  ;;  %v1662_v37 = vsel %vm1617_vm2, %v2225_v18, 0.0 }
0x1518   :  { %v1661_v56 = vadd.f32 %v1660_v3, %v1659_v35  ;;  %v2229_v40 = vpop.eup %2228  ;;  %v1664_v7 = vsel %vm1617_vm2, %v2227_v36, 0.0 }
0x1519   :  { %v2231_v42 = vpop.eup %2230  ;;  %v1666_v31 = vsel %vm1617_vm2, %v2229_v40, 0.0 }
0x151a   :  { %v1663_v41 = vadd.f32 %v1662_v37, %v1661_v56  ;;  %v2233_v44 = vpop.eup %2232  ;;  %v1668_v45 = vsel %vm1617_vm2, %v2231_v42, 0.0  ;;  %v2093_v56 = vld [vmem:[#allocation4 + $0x70] sm:$0xff] }
0x151b   :  { %v1670_v46 = vsel %vm1617_vm2, %v2233_v44, 0.0 }
0x151c   :  { %v1665_v43 = vadd.f32 %v1664_v7, %v1663_v41  ;;  %v1744_v41 = vrot.slane %v2590_v19, 2 }
0x151e   :  { %v1667_v30 = vadd.f32 %v1666_v31, %v1665_v43 }
0x1520   :  { %v1669_v34 = vadd.f32 %v1668_v45, %v1667_v30  ;;  %v1745_v30 = vrot.slane %v2590_v19, 4 }
0x1522   :  { %v1671_v39 = vadd.f32 %v1670_v46, %v1669_v34 }
0x1524   :  { %2234 = vrcp.f32 %v1671_v39  ;;  %v1683_v50 = vand.u32 2147483648, %v1671_v39  ;;  %v1681_v54 = vand.u32 2147483647, %v1671_v39  ;;  %vm1677_vm3 = vweird.f32 %v1671_v39 }
0x1526   :  { %v1684_v55 = vor.u32 1.1754944e-38, %v1683_v50  ;;  %vm1682_vm7 = vcmp.eq.f32.partialorder %v1681_v54, 8.507059e+37  ;;  %v1746_v50 = vrot.slane %v2590_v19, 6 }
0x152a   :  { %v2235_v47 = vpop.eup %2234 }
0x152b   :  { %v1673_v33 = vmul.f32 %v2235_v47, %v1671_v39  ;;  %vm1678_vm1 = vweird.f32 %v2235_v47 }
0x152c   :  { %vm1679_vm4 = vmor %vm1677_vm3, %vm1678_vm1 }
0x152d   :  { %v1674_v48 = vsub.f32 1.0, %v1673_v33 }
0x152f   :  { %v1675_v52 = vmul.f32 %v2235_v47, %v1674_v48 }
0x1531   :  { %v1676_v49 = vadd.f32 %v2235_v47, %v1675_v52 }
0x1533   :  { %v1680_v58 = vsel %vm1679_vm4, %v2235_v47, %v1676_v49 }
0x1534   :  { %v1685_v59 = vsel %vm1682_vm7, %v1684_v55, %v1680_v58 }
0x1535   :  { %v1688_v38 = vmul.f32 %v2223_v29, %v1685_v59  ;;  %v1687_v27 = vmul.f32 %v2221_v25, %v1685_v59  ;;  %v1686_v61 = vmul.f32 %v2219_v60, %v1685_v59  ;;  %v1691_v62 = vmul.f32 %v2229_v40, %v1685_v59 }
0x1536   :  { %v1690_v63 = vmul.f32 %v2227_v36, %v1685_v59  ;;  %v1689_v0 = vmul.f32 %v2225_v18, %v1685_v59  ;;  %v1693_v1 = vmul.f32 %v2233_v44, %v1685_v59  ;;  %v1692_v5 = vmul.f32 %v2231_v42, %v1685_v59  ;;  %v2094_v36 = vld [vmem:[#allocation4 + $0x78] sm:$0xff] }
0x1537   :  { %1706 = vrot.lane.b32.xlu0 %v1688_v38, %s2324_s4  ;;  %1704 = vrot.lane.b32.xlu2 %v1687_v27, %s2324_s4  ;;  %v2325_v29 = vmov 269488144  }
0x1538   :  { %1702 = vrot.lane.b32.xlu1 %v1686_v61, %s2324_s4  ;;  %v1762_v16 = vunpack.c.l.s4 %v2325_v29  ;;  %1883 = vmatpush.bf16.msra.mxu0 %v2094_v36  ;;  %v2121_v36 = vld [vmem:[#allocation6 + $0x7] ss:$0 sm:$0xff] }
0x153a   :  { %v1763_v35 = vunpack.c.0.s8 %v1762_v16 }
0x153c   :  { %1884 = vmatpush.bf16.msra.mxu0 %v2093_v56 }
0x153f   :  { %1712 = vrot.lane.b32.xlu0 %v1691_v62, %s2324_s4  ;;  %1710 = vrot.lane.b32.xlu2 %v1690_v63, %s2324_s4 }
0x1540   :  { %1708 = vrot.lane.b32.xlu1 %v1689_v0, %s2324_s4 }
0x1547   :  { %1716 = vrot.lane.b32.xlu2 %v1693_v1, %s2324_s4 }
0x1548   :  { %1714 = vrot.lane.b32.xlu1 %v1692_v5, %s2324_s4 }
0x1591   :  { %v1705_v6 = vpop.permute.xlu2 %1704 }
0x1592   :  { %v1727_v8 = vadd.f32 %v1705_v6, %v1687_v27  ;;  %v1747_v27 = vrot.slane %v2692_v9, 2  ;;  %v1749_v6 = vrot.slane %v2692_v9, 6 }
0x1594   :  { %v1735_v10 = vmul.f32 0.5, %v1727_v8  ;;  %v1748_v8 = vrot.slane %v2692_v9, 4 }
0x1596   :  { %1767 = vperm.xlu1 %2112, %v1735_v10  }
0x1599   :  { %v1711_v51 = vpop.permute.xlu2 %1710 }
0x159a   :  { %v1730_v15 = vadd.f32 %v1711_v51, %v1690_v63 }
0x159c   :  { %v1738_v23 = vmul.f32 0.5, %v1730_v15 }
0x15a1   :  { %v1717_v20 = vpop.permute.xlu2 %1716 }
0x15a2   :  { %v1733_v24 = vadd.f32 %v1717_v20, %v1693_v1 }
0x15a4   :  { %v1741_v26 = vmul.f32 0.5, %v1733_v24 }
0x15a9   :  { %v1707_v11 = vpop.permute.xlu0 %1706 }
0x15aa   :  { %v1728_v53 = vadd.f32 %v1707_v11, %v1688_v38  ;;  %v1703_v12 = vpop.permute.xlu1 %1702 }
0x15ab   :  { %v1726_v13 = vadd.f32 %v1703_v12, %v1686_v61 }
0x15ac   :  { %v1736_v4 = vmul.f32 0.5, %v1728_v53 }
0x15ad   :  { %v1734_v14 = vmul.f32 0.5, %v1726_v13 }
0x15ae   :  { %1776 = vperm.xlu2 %2113, %v1736_v4  }
0x15af   :  { %1758 = vperm.xlu0 %2111, %v1734_v14  }
0x15b1   :  { %v1713_v17 = vpop.permute.xlu0 %1712 }
0x15b2   :  { %v1731_v2 = vadd.f32 %v1713_v17, %v1691_v62  ;;  %v1709_v21 = vpop.permute.xlu1 %1708 }
0x15b3   :  { %v1729_v22 = vadd.f32 %v1709_v21, %v1689_v0 }
0x15b4   :  { %v1739_v57 = vmul.f32 0.5, %v1731_v2  ;;  %v2096_v2 = vld [vmem:[#allocation4 + $0x88] sm:$0xff] }
0x15b5   :  { %v1737_v32 = vmul.f32 0.5, %v1729_v22  ;;  %1921 = vmatpush.bf16.msra.mxu1 %v2096_v2  ;;  %v2097_v22 = vld [vmem:[#allocation4 + $0x90] sm:$0xff] }
0x15b6   :  { %1794 = vperm.xlu2 %2113, %v1738_v23   ;;  %1952 = vmatpush.bf16.msra.mxu2 %v2097_v22  ;;  %v2119_v23 = vld [vmem:[#allocation6 + $0x5] ss:$0 sm:$0xff] }
0x15b7   :  { %1803 = vperm.xlu0 %2111, %v1739_v57   ;;  %1785 = vperm.xlu1 %2112, %v1737_v32  }
0x15ba   :  { %v1715_v60 = vpop.permute.xlu1 %1714 }
0x15bb   :  { %v1732_v25 = vadd.f32 %v1715_v60, %v1692_v5 }
0x15bd   :  { %v1740_v28 = vmul.f32 0.5, %v1732_v25 }
0x15be   :  { %1821 = vperm.xlu2 %2113, %v1741_v26   ;;  %v2120_v26 = vld [vmem:[#allocation6 + $0x6] ss:$0 sm:$0xff] }
0x15bf   :  { %1812 = vperm.xlu1 %2112, %v1740_v28  }
0x1608   :  { %v1777_v18 = vpop.permute.xlu2 %1776  ;;  %v1768_v3 = vpop.permute.xlu1 %1767 }
0x1609   :  { %v1773_v37 = vperm.slane %v1768_v3, %v1763_v35  ;;  %v1782_v43 = vperm.slane %v1777_v18, %v1763_v35 }
0x160b   :  { %v1829_v31 = vmul.f32 %v1773_v37, %v1744_v41  ;;  %v1830_v34 = vmul.f32 %v1782_v43, %v1745_v30 }
0x160d   :  { %v1838_v46 = vsel %vm1836_vm9, %v1829_v31, 0.0  ;;  %v1840_v54 = vsel %vm1836_vm9, %v1830_v34, 0.0 }
0x1610   :  { %v1795_v42 = vpop.permute.xlu2 %1794 }
0x1611   :  { %v1800_v39 = vperm.slane %v1795_v42, %v1763_v35 }
0x1613   :  { %v1832_v49 = vmul.f32 %v1800_v39, %v2692_v9  ;;  %v2095_v9 = vld [vmem:[#allocation4 + $0x80] sm:$0xff] }
0x1614   :  { %1922 = vmatpush.bf16.msra.mxu1 %v2095_v9 }
0x1615   :  { %v1844_v63 = vsel %vm1836_vm9, %v1832_v49, 0.0 }
0x1618   :  { %v1822_v59 = vpop.permute.xlu2 %1821 }
0x1619   :  { %v1827_v0 = vperm.slane %v1822_v59, %v1763_v35 }
0x161b   :  { %v1835_v11 = vmul.f32 %v1827_v0, %v1749_v6 }
0x161d   :  { %v1850_v14 = vsel %vm1836_vm9, %v1835_v11, 0.0 }
0x1621   :  { %v1759_v40 = vpop.permute.xlu0 %1758 }
0x1622   :  { %v1764_v7 = vperm.slane %v1759_v40, %v1763_v35 }
0x1624   :  { %v1828_v44 = vmul.f32 %v1764_v7, %v2590_v19 }
0x1626   :  { %v1837_v45 = vsel %vm1836_vm9, %v1828_v44, 0.0 }
0x1627   :  { %v1839_v47 = vadd.f32 %v1838_v46, %v1837_v45 }
0x1629   :  { %v1804_v33 = vpop.permute.xlu0 %1803  ;;  %v1786_v48 = vpop.permute.xlu1 %1785  ;;  %v1841_v38 = vadd.f32 %v1840_v54, %v1839_v47 }
0x162a   :  { %v1791_v52 = vperm.slane %v1786_v48, %v1763_v35  ;;  %v1809_v55 = vperm.slane %v1804_v33, %v1763_v35 }
0x162c   :  { %v1831_v58 = vmul.f32 %v1791_v52, %v1746_v50  ;;  %v1833_v1 = vmul.f32 %v1809_v55, %v1747_v27 }
0x162e   :  { %v1842_v61 = vsel %vm1836_vm9, %v1831_v58, 0.0  ;;  %v1846_v53 = vsel %vm1836_vm9, %v1833_v1, 0.0 }
0x162f   :  { %v1843_v62 = vadd.f32 %v1842_v61, %v1841_v38 }
0x1631   :  { %v1845_v5 = vadd.f32 %v1844_v63, %v1843_v62  ;;  %v1813_v19 = vpop.permute.xlu1 %1812 }
0x1632   :  { %v1818_v10 = vperm.slane %v1813_v19, %v1763_v35 }
0x1633   :  { %v1847_v51 = vadd.f32 %v1846_v53, %v1845_v5 }
0x1634   :  { %v1834_v12 = vmul.f32 %v1818_v10, %v1748_v8 }
0x1636   :  { %v1848_v13 = vsel %vm1836_vm9, %v1834_v12, 0.0 }
0x1637   :  { %v1849_v4 = vadd.f32 %v1848_v13, %v1847_v51 }
0x1639   :  { %v1851_v15 = vadd.f32 %v1850_v14, %v1849_v4 }
0x163b   :  { %v1852_v17 = vpack.c.bf16 %v1851_v15, %v1851_v15 }
0x163d   :  { %1860 = vrot.lane.b32.xlu0 %v1852_v17, %s2323_s30 }
0x16af   :  { %v1861_v21 = vpop.permute.xlu0 %1860 }
0x16b0   :  { %2063 = vmatmul.msk.bf16.vlgmr.msra.gmra.mxu0 %vm148_vm6, %v1861_v21 }
0x172d   :  { %v1886_v57 = vpop.f32.mrf.mxu0 }
0x172e   :  { %v1887_v20 = vadd.f32 %v2119_v23, %v1886_v57 }
0x1730   :  { %vm1890_vm10 = vcmp.gt.f32.partialorder %v1887_v20, 0.0  ;;  %v1891_v32 = vmul.f32 0.1, %v1887_v20 }
0x1732   :  { %v1892_v24 = vsel %vm1890_vm10, %v1887_v20, %v1891_v32 }
0x1733   :  { %v1893_v60 = vpack.c.bf16 %v1892_v24, %v1892_v24 }
0x1735   :  { %v1888_v25 = vpop.f32.mrf.mxu0  ;;  %2072 = vmatmul.msk.bf16.vlgmr.msra.gmra.mxu1 %vm148_vm6, %v1893_v60 }
0x17b2   :  { %v1924_v28 = vpop.f32.mrf.mxu1 }
0x17b3   :  { %v1925_v29 = vadd.f32 %v2120_v26, %v1924_v28 }
0x17b5   :  { %vm1928_vm8 = vcmp.gt.f32.partialorder %v1925_v29, 0.0  ;;  %v1929_v16 = vmul.f32 0.1, %v1925_v29 }
0x17b7   :  { %v1930_v18 = vsel %vm1928_vm8, %v1925_v29, %v1929_v16 }
0x17b8   :  { %v1931_v35 = vpack.c.bf16 %v1930_v18, %v1930_v18 }
0x17ba   :  { %v1926_v3 = vpop.f32.mrf.mxu1  ;;  %2077 = vmatmul.msk.bf16.vlgmr.msra.gmra.mxu2 %vm2744_vm12, %v1931_v35 }
0x183d   :  { %v1954_v56 = vpop.f32.mrf.mxu2 }
0x183e   :  { %v1955_v37 = vadd.f32 %v2121_v36, %v1954_v56 }
0x1840   :  { %1959 = vst.msk [vmem:[%s2740_s3] sm:$0x3] %vm1958_vm0, %v1955_v37 }
0x1845   :  { %v1956_v40 = vpop.f32.mrf.mxu2 }
0x1846   :  { %1964 = vsyncpa [#allocation3], 1 }
0x1847   :  { %1965 = vsyncpa [#allocation5], 1 }

</bundles_post_ra>
